<compile_context>
chip_gen: v7x
topology: tpu7x:2x2x1
jax: 0.10.0
libtpu: 0.0.40
codegen_flags: <defaults>
</compile_context>

<pallas_src>
import jax
import jax.numpy as jnp
from jax import lax
from jax.experimental import pallas as pl
from jax.experimental.pallas import tpu as pltpu

# ---- small, shape-consistent hyperparameters -------------------------------
BATCH      = 2
SENT_LEN   = 8                      # L
EMBED_LEN  = 32                     # E
ATT_HEADS  = 4                      # H
HEAD_DIM   = EMBED_LEN // ATT_HEADS # Dh
MULT       = 64                     # transformer FFN hidden size
HIDDEN     = 32                     # hidden_size
NUM_LAYERS = 2
VOCAB_SIZE = 50
PAD_IDX    = 0
LN_EPS     = 1e-5
BL         = BATCH * SENT_LEN       # rows processed per step


# =============================================================================
# Fused forward kernel (single grid step, all weights resident in VMEM)
# =============================================================================
def _layer_norm(y, gamma, beta):
    mu = jnp.mean(y, axis=-1, keepdims=True)
    var = jnp.mean((y - mu) ** 2, axis=-1, keepdims=True)
    # rsqrt lands on the EUP (its own VLIW slot) instead of a VALU divide.
    return (y - mu) * lax.rsqrt(var + LN_EPS) * gamma + beta


def _fused_forward_kernel(
        tok_ref, wemb_ref, pemb_ref,
        wqkv_ref, bqkv_ref, wo_ref, bo_ref,
        g1_ref, be1_ref, g2_ref, be2_ref,
        w1_ref, b1_ref, w2_ref, b2_ref,
        wss1_ref, bss1_ref, wss2_ref, bss2_ref,
        wfc1_ref, bfc1_ref, wq_ref, bq_ref,
        o_ref):
    # ---- embedding: one-hot @ table (MXU friendly, avoids in-kernel gather) --
    tok = tok_ref[...]                                              # (BL, 1) i32
    vocab_ids = lax.broadcasted_iota(jnp.int32, (BL, VOCAB_SIZE), 1)
    onehot = (tok == vocab_ids).astype(jnp.float32)                 # (BL, V)
    x = jnp.dot(onehot, wemb_ref[...], preferred_element_type=jnp.float32)
    x = x + jnp.tile(pemb_ref[...], (BATCH, 1))                     # (BL, E)

    # ---- transformer encoder stack (post-LN, ReLU), unrolled over layers ----
    for l in range(NUM_LAYERS):
        # Fused QKV projection; 1/sqrt(Dh) is pre-folded into the Q columns.
        qkv = (jnp.dot(x, wqkv_ref[l], preferred_element_type=jnp.float32)
               + bqkv_ref[l])                                       # (BL, 3E)

        def to_head_batch(base, qkv=qkv):
            # (BL, E) slice -> (H*B, L, Dh): lane slices + leading-axis concat,
            # no 4-D transposes.  Batch index g = h*B + b.
            return jnp.concatenate(
                [qkv[:, base + h * HEAD_DIM: base + (h + 1) * HEAD_DIM]
                     .reshape(BATCH, SENT_LEN, HEAD_DIM)
                 for h in range(ATT_HEADS)], axis=0)

        q = to_head_batch(0)
        k = to_head_batch(EMBED_LEN)
        v = to_head_batch(2 * EMBED_LEN)

        # Batched attention over the merged (head, batch) dim.
        s = jnp.einsum('gld,gmd->glm', q, k,
                       preferred_element_type=jnp.float32)          # (HB, L, L)
        s = s - jnp.max(s, axis=-1, keepdims=True)
        p = jnp.exp(s)
        p = p * pl.reciprocal(jnp.sum(p, axis=-1, keepdims=True), approx=True)
        o = jnp.einsum('glm,gmd->gld', p, v,
                       preferred_element_type=jnp.float32)          # (HB, L, Dh)

        # Re-pack heads onto the lane dim: (HB, L, Dh) -> (BL, E), then ONE
        # full-width output projection.
        attn = jnp.concatenate(
            [o[h * BATCH:(h + 1) * BATCH].reshape(BL, HEAD_DIM)
             for h in range(ATT_HEADS)], axis=1)                    # (BL, E)
        attn = (jnp.dot(attn, wo_ref[l], preferred_element_type=jnp.float32)
                + bo_ref[l])

        # residual + LayerNorm1 (dropout == identity at inference)
        y = _layer_norm(x + attn, g1_ref[l], be1_ref[l])

        # FFN: Linear(E, MULT) -> ReLU -> Linear(MULT, E)
        h1 = jnp.maximum(
            jnp.dot(y, w1_ref[l], preferred_element_type=jnp.float32) + b1_ref[l],
            0.0)
        f = jnp.dot(h1, w2_ref[l], preferred_element_type=jnp.float32) + b2_ref[l]

        # residual + LayerNorm2
        x = _layer_norm(y + f, g2_ref[l], be2_ref[l])

    # ---- head: in-kernel flatten + sequence_summary + fc_1 + fc_quad --------
    # Flatten (B, L, E) -> (B, L*E) via lane concatenation (lane-dense, avoids
    # a general cross-tile reshape).
    x3 = x.reshape(BATCH, SENT_LEN, EMBED_LEN)
    flat = jnp.concatenate([x3[:, l, :] for l in range(SENT_LEN)], axis=1)  # (B, L*E)

    s1 = jnp.maximum(
        jnp.dot(flat, wss1_ref[...], preferred_element_type=jnp.float32)
        + bss1_ref[...], 0.0)
    s2 = (jnp.dot(s1, wss2_ref[...], preferred_element_type=jnp.float32)
          + bss2_ref[...])
    f1 = (jnp.dot(jnp.maximum(s2, 0.0), wfc1_ref[...],
                  preferred_element_type=jnp.float32) + bfc1_ref[...])
    qd = (jnp.dot(jnp.maximum(f1, 0.0), wq_ref[...],
                  preferred_element_type=jnp.float32) + bq_ref[...])
    o_ref[...] = qd


def multitask_forward(tokens, pp):
    """Fused forward for the version==0 path. `pp` = prepared (pre-transposed,
    scale-folded, layer-stacked) parameters from prep_params()."""
    tok2 = tokens.reshape(BL, 1).astype(jnp.int32)

    def full(a):
        shp = a.shape
        return pl.BlockSpec(shp, lambda i, _n=len(shp): (0,) * _n)

    args = (tok2, pp['word_emb'], pp['pos_emb'],
            pp['wqkv'], pp['bqkv'], pp['wo'], pp['bo'],
            pp['g1'], pp['be1'], pp['g2'], pp['be2'],
            pp['w1'], pp['b1'], pp['w2'], pp['b2'],
            pp['wss1'], pp['bss1'], pp['wss2'], pp['bss2'],
            pp['wfc1'], pp['bfc1'], pp['wq'], pp['bq'])

    return pl.pallas_call(
        _fused_forward_kernel,
        out_shape=jax.ShapeDtypeStruct((BATCH, 4), jnp.float32),
        grid=(1,),
        in_specs=[full(a) for a in args],
        out_specs=pl.BlockSpec((BATCH, 4), lambda i: (0, 0)),
        compiler_params=pltpu.CompilerParams(
            dimension_semantics=("arbitrary",)),
    )(*args)


multitask_forward_jit = jax.jit(multitask_forward)


# =============================================================================
# Parameters: PyTorch-layout init + one-time host-side prep (transpose / fold /
# stack) so the kernel never transposes weights or multiplies by the softmax
# scale.
# =============================================================================
def init_params(key):
    keys = iter(jax.random.split(key, 64))

    def nrm(shape, scale=0.05):
        return (scale * jax.random.normal(next(keys), shape)).astype(jnp.float32)

    word_emb = nrm((VOCAB_SIZE, EMBED_LEN))
    word_emb = word_emb.at[PAD_IDX].set(0.0)   # nn.Embedding padding_idx row zeroed
    pos_emb = nrm((SENT_LEN, EMBED_LEN))

    layers = []
    for _ in range(NUM_LAYERS):
        layers.append(dict(
            wqkv=nrm((3 * EMBED_LEN, EMBED_LEN)), bqkv=nrm((3 * EMBED_LEN,)),
            wo=nrm((EMBED_LEN, EMBED_LEN)),       bo=nrm((EMBED_LEN,)),
            g1=jnp.ones((EMBED_LEN,), jnp.float32),
            be1=jnp.zeros((EMBED_LEN,), jnp.float32),
            g2=jnp.ones((EMBED_LEN,), jnp.float32),
            be2=jnp.zeros((EMBED_LEN,), jnp.float32),
            w1=nrm((MULT, EMBED_LEN)),            b1=nrm((MULT,)),
            w2=nrm((EMBED_LEN, MULT)),            b2=nrm((EMBED_LEN,)),
        ))

    head = dict(
        wss1=nrm((EMBED_LEN, SENT_LEN * EMBED_LEN)), bss1=nrm((EMBED_LEN,)),
        wss2=nrm((2 * HIDDEN, EMBED_LEN)),           bss2=nrm((2 * HIDDEN,)),
        wfc1=nrm((HIDDEN, 2 * HIDDEN)),              bfc1=nrm((HIDDEN,)),
        wq=nrm((4, HIDDEN)),                         bq=nrm((4,)),
    )
    return dict(word_emb=word_emb, pos_emb=pos_emb, layers=layers, head=head)


def prep_params(p):
    """One-time host-side weight prep: x@W layout, scale fold, layer stacking."""
    scale = 1.0 / (HEAD_DIM ** 0.5)

    def stack_t(name):          # (NL, in, out), already in x@W layout
        return jnp.stack([lp[name].T for lp in p['layers']], axis=0)

    def stack_row(name):        # (NL, 1, n)
        return jnp.stack([lp[name].reshape(1, -1) for lp in p['layers']], axis=0)

    wqkv = stack_t('wqkv')                                   # (NL, E, 3E)
    wqkv = wqkv.at[:, :, :EMBED_LEN].multiply(scale)         # fold 1/sqrt(Dh) into Q
    bqkv = stack_row('bqkv')
    bqkv = bqkv.at[:, :, :EMBED_LEN].multiply(scale)

    hp = p['head']
    return dict(
        word_emb=p['word_emb'], pos_emb=p['pos_emb'],
        wqkv=wqkv, bqkv=bqkv,
        wo=stack_t('wo'), bo=stack_row('bo'),
        g1=stack_row('g1'), be1=stack_row('be1'),
        g2=stack_row('g2'), be2=stack_row('be2'),
        w1=stack_t('w1'), b1=stack_row('b1'),
        w2=stack_t('w2'), b2=stack_row('b2'),
        wss1=hp['wss1'].T, bss1=hp['bss1'].reshape(1, -1),
        wss2=hp['wss2'].T, bss2=hp['bss2'].reshape(1, -1),
        wfc1=hp['wfc1'].T, bfc1=hp['bfc1'].reshape(1, -1),
        wq=hp['wq'].T,     bq=hp['bq'].reshape(1, -1),
    )


# =============================================================================
# Pure-JAX reference (mirrors the PyTorch math directly) for a sanity check.
# =============================================================================
def reference_forward(tokens, p):
    def ln(y, g, b):
        mu = jnp.mean(y, axis=-1, keepdims=True)
        var = jnp.mean((y - mu) ** 2, axis=-1, keepdims=True)
        return (y - mu) / jnp.sqrt(var + LN_EPS) * g + b

    with jax.default_matmul_precision("float32"):
        x = p['word_emb'][tokens] + p['pos_emb'][jnp.arange(SENT_LEN)][None]
        x = x.astype(jnp.float32)
        scale = 1.0 / (HEAD_DIM ** 0.5)
        for lp in p['layers']:
            qkv = jnp.einsum('ble,fe->blf', x, lp['wqkv']) + lp['bqkv']
            q, k, v = jnp.split(qkv, 3, axis=-1)
            rs = lambda t: t.reshape(BATCH, SENT_LEN, ATT_HEADS, HEAD_DIM).transpose(0, 2, 1, 3)
            q, k, v = rs(q), rs(k), rs(v)
            s = jnp.einsum('bhld,bhmd->bhlm', q, k) * scale
            a = jax.nn.softmax(s, axis=-1)
            o = jnp.einsum('bhlm,bhmd->bhld', a, v)
            o = o.transpose(0, 2, 1, 3).reshape(BATCH, SENT_LEN, EMBED_LEN)
            attn = jnp.einsum('ble,fe->blf', o, lp['wo']) + lp['bo']
            y = ln(x + attn, lp['g1'], lp['be1'])
            h1 = jax.nn.relu(jnp.einsum('ble,fe->blf', y, lp['w1']) + lp['b1'])
            f = jnp.einsum('blm,em->ble', h1, lp['w2']) + lp['b2']
            x = ln(y + f, lp['g2'], lp['be2'])
        flat = x.reshape(BATCH, SENT_LEN * EMBED_LEN)
        hp = p['head']
        s1 = jax.nn.relu(flat @ hp['wss1'].T + hp['bss1'])
        s2 = s1 @ hp['wss2'].T + hp['bss2']
        f1 = jax.nn.relu(s2) @ hp['wfc1'].T + hp['bfc1']
        return jax.nn.relu(f1) @ hp['wq'].T + hp['bq']


if __name__ == "__main__":
    key = jax.random.PRNGKey(0)
    pkey, tkey = jax.random.split(key)
    params = init_params(pkey)
    prepared = prep_params(params)
    tokens = jax.random.randint(tkey, (BATCH, SENT_LEN), 0, VOCAB_SIZE, dtype=jnp.int32)

    out = multitask_forward_jit(tokens, prepared)
    out = jax.block_until_ready(out)

    assert out.shape == (BATCH, 4), out.shape
    assert bool(jnp.all(jnp.isfinite(out)))

    # Sanity check against the pure-JAX reference (approx reciprocal in the
    # kernel softmax => allow a small tolerance).
    ref = jax.block_until_ready(reference_forward(tokens, params))
    assert bool(jnp.allclose(out, ref, rtol=5e-2, atol=5e-3)), (out, ref)

    print("KERNEL_OK")
</pallas_src>

<mosaic_0001>
module attributes {stable_mosaic.version = 11 : i64} {
  func.func @_fused_forward_kernel(%arg0: i32, %arg1: memref<16x1xi32, #tpu.memory_space<vmem>>, %arg2: memref<50x32xf32, #tpu.memory_space<vmem>>, %arg3: memref<8x32xf32, #tpu.memory_space<vmem>>, %arg4: memref<2x32x96xf32, #tpu.memory_space<vmem>>, %arg5: memref<2x1x96xf32, #tpu.memory_space<vmem>>, %arg6: memref<2x32x32xf32, #tpu.memory_space<vmem>>, %arg7: memref<2x1x32xf32, #tpu.memory_space<vmem>>, %arg8: memref<2x1x32xf32, #tpu.memory_space<vmem>>, %arg9: memref<2x1x32xf32, #tpu.memory_space<vmem>>, %arg10: memref<2x1x32xf32, #tpu.memory_space<vmem>>, %arg11: memref<2x1x32xf32, #tpu.memory_space<vmem>>, %arg12: memref<2x32x64xf32, #tpu.memory_space<vmem>>, %arg13: memref<2x1x64xf32, #tpu.memory_space<vmem>>, %arg14: memref<2x64x32xf32, #tpu.memory_space<vmem>>, %arg15: memref<2x1x32xf32, #tpu.memory_space<vmem>>, %arg16: memref<256x32xf32, #tpu.memory_space<vmem>>, %arg17: memref<1x32xf32, #tpu.memory_space<vmem>>, %arg18: memref<32x64xf32, #tpu.memory_space<vmem>>, %arg19: memref<1x64xf32, #tpu.memory_space<vmem>>, %arg20: memref<64x32xf32, #tpu.memory_space<vmem>>, %arg21: memref<1x32xf32, #tpu.memory_space<vmem>>, %arg22: memref<32x4xf32, #tpu.memory_space<vmem>>, %arg23: memref<1x4xf32, #tpu.memory_space<vmem>>, %arg24: memref<2x4xf32, #tpu.memory_space<vmem>>) attributes {dimension_semantics = [#tpu.dimension_semantics<arbitrary>], iteration_bounds = array<i64: 1>, scalar_prefetch = 0 : i64, scratch_operands = 0 : i64, tpu.core_type = #tpu.core_type<tc>, window_params = [{pipeline_mode = #tpu.pipeline_mode<synchronous>, transform_indices = @transform_0, window_bounds = array<i64: 16, 1>}, {pipeline_mode = #tpu.pipeline_mode<synchronous>, transform_indices = @transform_1, window_bounds = array<i64: 50, 32>}, {pipeline_mode = #tpu.pipeline_mode<synchronous>, transform_indices = @transform_2, window_bounds = array<i64: 8, 32>}, {pipeline_mode = #tpu.pipeline_mode<synchronous>, transform_indices = @transform_3, window_bounds = array<i64: 2, 32, 96>}, {pipeline_mode = #tpu.pipeline_mode<synchronous>, transform_indices = @transform_4, window_bounds = array<i64: 2, 1, 96>}, {pipeline_mode = #tpu.pipeline_mode<synchronous>, transform_indices = @transform_5, window_bounds = array<i64: 2, 32, 32>}, {pipeline_mode = #tpu.pipeline_mode<synchronous>, transform_indices = @transform_6, window_bounds = array<i64: 2, 1, 32>}, {pipeline_mode = #tpu.pipeline_mode<synchronous>, transform_indices = @transform_7, window_bounds = array<i64: 2, 1, 32>}, {pipeline_mode = #tpu.pipeline_mode<synchronous>, transform_indices = @transform_8, window_bounds = array<i64: 2, 1, 32>}, {pipeline_mode = #tpu.pipeline_mode<synchronous>, transform_indices = @transform_9, window_bounds = array<i64: 2, 1, 32>}, {pipeline_mode = #tpu.pipeline_mode<synchronous>, transform_indices = @transform_10, window_bounds = array<i64: 2, 1, 32>}, {pipeline_mode = #tpu.pipeline_mode<synchronous>, transform_indices = @transform_11, window_bounds = array<i64: 2, 32, 64>}, {pipeline_mode = #tpu.pipeline_mode<synchronous>, transform_indices = @transform_12, window_bounds = array<i64: 2, 1, 64>}, {pipeline_mode = #tpu.pipeline_mode<synchronous>, transform_indices = @transform_13, window_bounds = array<i64: 2, 64, 32>}, {pipeline_mode = #tpu.pipeline_mode<synchronous>, transform_indices = @transform_14, window_bounds = array<i64: 2, 1, 32>}, {pipeline_mode = #tpu.pipeline_mode<synchronous>, transform_indices = @transform_15, window_bounds = array<i64: 256, 32>}, {pipeline_mode = #tpu.pipeline_mode<synchronous>, transform_indices = @transform_16, window_bounds = array<i64: 1, 32>}, {pipeline_mode = #tpu.pipeline_mode<synchronous>, transform_indices = @transform_17, window_bounds = array<i64: 32, 64>}, {pipeline_mode = #tpu.pipeline_mode<synchronous>, transform_indices = @transform_18, window_bounds = array<i64: 1, 64>}, {pipeline_mode = #tpu.pipeline_mode<synchronous>, transform_indices = @transform_19, window_bounds = array<i64: 64, 32>}, {pipeline_mode = #tpu.pipeline_mode<synchronous>, transform_indices = @transform_20, window_bounds = array<i64: 1, 32>}, {pipeline_mode = #tpu.pipeline_mode<synchronous>, transform_indices = @transform_21, window_bounds = array<i64: 32, 4>}, {pipeline_mode = #tpu.pipeline_mode<synchronous>, transform_indices = @transform_22, window_bounds = array<i64: 1, 4>}, {pipeline_mode = #tpu.pipeline_mode<synchronous>, transform_indices = @transform_23, window_bounds = array<i64: 2, 4>}]} {
    %c0 = arith.constant 0 : index
    %c0_0 = arith.constant 0 : index
    %0 = vector.load %arg1[%c0, %c0_0] : memref<16x1xi32, #tpu.memory_space<vmem>>, vector<16x1xi32>
    %1 = tpu.iota {dimensions = array<i32: 1>} : vector<16x50xi32>
    %2 = vector.broadcast %0 : vector<16x1xi32> to vector<16x50xi32>
    %3 = arith.cmpi eq, %2, %1 : vector<16x50xi32>
    %4 = arith.extui %3 : vector<16x50xi1> to vector<16x50xi32>
    %5 = arith.sitofp %4 : vector<16x50xi32> to vector<16x50xf32>
    %c0_1 = arith.constant 0 : index
    %c0_2 = arith.constant 0 : index
    %6 = vector.load %arg2[%c0_1, %c0_2] : memref<50x32xf32, #tpu.memory_space<vmem>>, vector<50x32xf32>
    %cst = arith.constant dense<0.000000e+00> : vector<16x32xf32>
    %7 = tpu.matmul %5, %6, %cst {dimension_numbers = #tpu.dot_dimension_numbers<[1], [0], [0], [1], [0, 0, 1, 1], [], []>} : vector<16x50xf32>, vector<50x32xf32>, vector<16x32xf32> -> vector<16x32xf32>
    %c0_3 = arith.constant 0 : index
    %c0_4 = arith.constant 0 : index
    %8 = vector.load %arg3[%c0_3, %c0_4] : memref<8x32xf32, #tpu.memory_space<vmem>>, vector<8x32xf32>
    %9 = tpu.concatenate %8, %8 in 0 : vector<8x32xf32>, vector<8x32xf32> -> vector<16x32xf32>
    %10 = arith.addf %7, %9 : vector<16x32xf32>
    %c0_5 = arith.constant 0 : index
    %c0_6 = arith.constant 0 : index
    %c0_7 = arith.constant 0 : index
    %11 = vector.load %arg4[%c0_5, %c0_6, %c0_7] : memref<2x32x96xf32, #tpu.memory_space<vmem>>, vector<1x32x96xf32>
    %12 = vector.shape_cast %11 : vector<1x32x96xf32> to vector<32x96xf32>
    %cst_8 = arith.constant dense<0.000000e+00> : vector<16x96xf32>
    %13 = tpu.matmul %10, %12, %cst_8 {dimension_numbers = #tpu.dot_dimension_numbers<[1], [0], [0], [1], [0, 0, 1, 1], [], []>} : vector<16x32xf32>, vector<32x96xf32>, vector<16x96xf32> -> vector<16x96xf32>
    %c0_9 = arith.constant 0 : index
    %c0_10 = arith.constant 0 : index
    %c0_11 = arith.constant 0 : index
    %14 = vector.load %arg5[%c0_9, %c0_10, %c0_11] : memref<2x1x96xf32, #tpu.memory_space<vmem>>, vector<1x1x96xf32>
    %15 = vector.shape_cast %14 : vector<1x1x96xf32> to vector<1x96xf32>
    %16 = vector.broadcast %15 : vector<1x96xf32> to vector<16x96xf32>
    %17 = arith.addf %13, %16 : vector<16x96xf32>
    %18 = vector.extract_strided_slice %17 {offsets = [0, 0], sizes = [16, 8], strides = [1, 1]} : vector<16x96xf32> to vector<16x8xf32>
    %19 = vector.shape_cast %18 : vector<16x8xf32> to vector<2x8x8xf32>
    %20 = vector.extract_strided_slice %17 {offsets = [0, 8], sizes = [16, 8], strides = [1, 1]} : vector<16x96xf32> to vector<16x8xf32>
    %21 = vector.shape_cast %20 : vector<16x8xf32> to vector<2x8x8xf32>
    %22 = vector.extract_strided_slice %17 {offsets = [0, 16], sizes = [16, 8], strides = [1, 1]} : vector<16x96xf32> to vector<16x8xf32>
    %23 = vector.shape_cast %22 : vector<16x8xf32> to vector<2x8x8xf32>
    %24 = vector.extract_strided_slice %17 {offsets = [0, 24], sizes = [16, 8], strides = [1, 1]} : vector<16x96xf32> to vector<16x8xf32>
    %25 = vector.shape_cast %24 : vector<16x8xf32> to vector<2x8x8xf32>
    %26 = tpu.concatenate %19, %21, %23, %25 in 0 : vector<2x8x8xf32>, vector<2x8x8xf32>, vector<2x8x8xf32>, vector<2x8x8xf32> -> vector<8x8x8xf32>
    %27 = vector.extract_strided_slice %17 {offsets = [0, 32], sizes = [16, 8], strides = [1, 1]} : vector<16x96xf32> to vector<16x8xf32>
    %28 = vector.shape_cast %27 : vector<16x8xf32> to vector<2x8x8xf32>
    %29 = vector.extract_strided_slice %17 {offsets = [0, 40], sizes = [16, 8], strides = [1, 1]} : vector<16x96xf32> to vector<16x8xf32>
    %30 = vector.shape_cast %29 : vector<16x8xf32> to vector<2x8x8xf32>
    %31 = vector.extract_strided_slice %17 {offsets = [0, 48], sizes = [16, 8], strides = [1, 1]} : vector<16x96xf32> to vector<16x8xf32>
    %32 = vector.shape_cast %31 : vector<16x8xf32> to vector<2x8x8xf32>
    %33 = vector.extract_strided_slice %17 {offsets = [0, 56], sizes = [16, 8], strides = [1, 1]} : vector<16x96xf32> to vector<16x8xf32>
    %34 = vector.shape_cast %33 : vector<16x8xf32> to vector<2x8x8xf32>
    %35 = tpu.concatenate %28, %30, %32, %34 in 0 : vector<2x8x8xf32>, vector<2x8x8xf32>, vector<2x8x8xf32>, vector<2x8x8xf32> -> vector<8x8x8xf32>
    %36 = vector.extract_strided_slice %17 {offsets = [0, 64], sizes = [16, 8], strides = [1, 1]} : vector<16x96xf32> to vector<16x8xf32>
    %37 = vector.shape_cast %36 : vector<16x8xf32> to vector<2x8x8xf32>
    %38 = vector.extract_strided_slice %17 {offsets = [0, 72], sizes = [16, 8], strides = [1, 1]} : vector<16x96xf32> to vector<16x8xf32>
    %39 = vector.shape_cast %38 : vector<16x8xf32> to vector<2x8x8xf32>
    %40 = vector.extract_strided_slice %17 {offsets = [0, 80], sizes = [16, 8], strides = [1, 1]} : vector<16x96xf32> to vector<16x8xf32>
    %41 = vector.shape_cast %40 : vector<16x8xf32> to vector<2x8x8xf32>
    %42 = vector.extract_strided_slice %17 {offsets = [0, 88], sizes = [16, 8], strides = [1, 1]} : vector<16x96xf32> to vector<16x8xf32>
    %43 = vector.shape_cast %42 : vector<16x8xf32> to vector<2x8x8xf32>
    %44 = tpu.concatenate %37, %39, %41, %43 in 0 : vector<2x8x8xf32>, vector<2x8x8xf32>, vector<2x8x8xf32>, vector<2x8x8xf32> -> vector<8x8x8xf32>
    "tpu.trace_start"() <{level = 10 : i32, message = "gld,gmd->glm"}> : () -> ()
    %cst_12 = arith.constant dense<0.000000e+00> : vector<8x8x8xf32>
    %45 = tpu.matmul %26, %35, %cst_12 {dimension_numbers = #tpu.dot_dimension_numbers<[2], [2], [1], [1], [0, 0, 0, 1, 1, 1], [0], [0]>} : vector<8x8x8xf32>, vector<8x8x8xf32>, vector<8x8x8xf32> -> vector<8x8x8xf32>
    "tpu.trace_stop"() : () -> ()
    %cst_13 = arith.constant dense<0xFF800000> : vector<8x8xf32>
    %46 = vector.multi_reduction <maximumf>, %45, %cst_13 [2] : vector<8x8x8xf32> to vector<8x8xf32>
    %47 = vector.shape_cast %46 : vector<8x8xf32> to vector<8x8x1xf32>
    %48 = vector.broadcast %47 : vector<8x8x1xf32> to vector<8x8x8xf32>
    %49 = arith.subf %45, %48 : vector<8x8x8xf32>
    %50 = math.exp %49 : vector<8x8x8xf32>
    %cst_14 = arith.constant dense<0.000000e+00> : vector<8x8xf32>
    %51 = vector.multi_reduction <add>, %50, %cst_14 [2] : vector<8x8x8xf32> to vector<8x8xf32>
    %52 = vector.shape_cast %51 : vector<8x8xf32> to vector<8x8x1xf32>
    %53 = tpu.reciprocal %52 {approx = true} : vector<8x8x1xf32> -> vector<8x8x1xf32>
    %54 = vector.broadcast %53 : vector<8x8x1xf32> to vector<8x8x8xf32>
    %55 = arith.mulf %50, %54 : vector<8x8x8xf32>
    "tpu.trace_start"() <{level = 10 : i32, message = "glm,gmd->gld"}> : () -> ()
    %cst_15 = arith.constant dense<0.000000e+00> : vector<8x8x8xf32>
    %56 = tpu.matmul %55, %44, %cst_15 {dimension_numbers = #tpu.dot_dimension_numbers<[2], [1], [1], [2], [0, 0, 0, 1, 1, 2], [0], [0]>} : vector<8x8x8xf32>, vector<8x8x8xf32>, vector<8x8x8xf32> -> vector<8x8x8xf32>
    "tpu.trace_stop"() : () -> ()
    %57 = vector.extract_strided_slice %56 {offsets = [0, 0, 0], sizes = [2, 8, 8], strides = [1, 1, 1]} : vector<8x8x8xf32> to vector<2x8x8xf32>
    %58 = vector.shape_cast %57 : vector<2x8x8xf32> to vector<16x8xf32>
    %59 = vector.extract_strided_slice %56 {offsets = [2, 0, 0], sizes = [2, 8, 8], strides = [1, 1, 1]} : vector<8x8x8xf32> to vector<2x8x8xf32>
    %60 = vector.shape_cast %59 : vector<2x8x8xf32> to vector<16x8xf32>
    %61 = vector.extract_strided_slice %56 {offsets = [4, 0, 0], sizes = [2, 8, 8], strides = [1, 1, 1]} : vector<8x8x8xf32> to vector<2x8x8xf32>
    %62 = vector.shape_cast %61 : vector<2x8x8xf32> to vector<16x8xf32>
    %63 = vector.extract_strided_slice %56 {offsets = [6, 0, 0], sizes = [2, 8, 8], strides = [1, 1, 1]} : vector<8x8x8xf32> to vector<2x8x8xf32>
    %64 = vector.shape_cast %63 : vector<2x8x8xf32> to vector<16x8xf32>
    %65 = tpu.concatenate %58, %60, %62, %64 in 1 : vector<16x8xf32>, vector<16x8xf32>, vector<16x8xf32>, vector<16x8xf32> -> vector<16x32xf32>
    %c0_16 = arith.constant 0 : index
    %c0_17 = arith.constant 0 : index
    %c0_18 = arith.constant 0 : index
    %66 = vector.load %arg6[%c0_16, %c0_17, %c0_18] : memref<2x32x32xf32, #tpu.memory_space<vmem>>, vector<1x32x32xf32>
    %67 = vector.shape_cast %66 : vector<1x32x32xf32> to vector<32x32xf32>
    %cst_19 = arith.constant dense<0.000000e+00> : vector<16x32xf32>
    %68 = tpu.matmul %65, %67, %cst_19 {dimension_numbers = #tpu.dot_dimension_numbers<[1], [0], [0], [1], [0, 0, 1, 1], [], []>} : vector<16x32xf32>, vector<32x32xf32>, vector<16x32xf32> -> vector<16x32xf32>
    %c0_20 = arith.constant 0 : index
    %c0_21 = arith.constant 0 : index
    %c0_22 = arith.constant 0 : index
    %69 = vector.load %arg7[%c0_20, %c0_21, %c0_22] : memref<2x1x32xf32, #tpu.memory_space<vmem>>, vector<1x1x32xf32>
    %70 = vector.shape_cast %69 : vector<1x1x32xf32> to vector<1x32xf32>
    %71 = vector.broadcast %70 : vector<1x32xf32> to vector<16x32xf32>
    %72 = arith.addf %68, %71 : vector<16x32xf32>
    %73 = arith.addf %10, %72 : vector<16x32xf32>
    %c0_23 = arith.constant 0 : index
    %c0_24 = arith.constant 0 : index
    %c0_25 = arith.constant 0 : index
    %74 = vector.load %arg8[%c0_23, %c0_24, %c0_25] : memref<2x1x32xf32, #tpu.memory_space<vmem>>, vector<1x1x32xf32>
    %75 = vector.shape_cast %74 : vector<1x1x32xf32> to vector<1x32xf32>
    %c0_26 = arith.constant 0 : index
    %c0_27 = arith.constant 0 : index
    %c0_28 = arith.constant 0 : index
    %76 = vector.load %arg9[%c0_26, %c0_27, %c0_28] : memref<2x1x32xf32, #tpu.memory_space<vmem>>, vector<1x1x32xf32>
    %77 = vector.shape_cast %76 : vector<1x1x32xf32> to vector<1x32xf32>
    %cst_29 = arith.constant dense<0.000000e+00> : vector<16xf32>
    %78 = vector.multi_reduction <add>, %73, %cst_29 [1] : vector<16x32xf32> to vector<16xf32>
    %79 = vector.shape_cast %78 : vector<16xf32> to vector<16x1xf32>
    %cst_30 = arith.constant 3.200000e+01 : f32
    %80 = vector.broadcast %cst_30 : f32 to vector<16x1xf32>
    %81 = arith.divf %79, %80 : vector<16x1xf32>
    %82 = vector.broadcast %81 : vector<16x1xf32> to vector<16x32xf32>
    %83 = arith.subf %73, %82 : vector<16x32xf32>
    %84 = arith.mulf %83, %83 : vector<16x32xf32>
    %cst_31 = arith.constant dense<0.000000e+00> : vector<16xf32>
    %85 = vector.multi_reduction <add>, %84, %cst_31 [1] : vector<16x32xf32> to vector<16xf32>
    %86 = vector.shape_cast %85 : vector<16xf32> to vector<16x1xf32>
    %cst_32 = arith.constant 3.200000e+01 : f32
    %87 = vector.broadcast %cst_32 : f32 to vector<16x1xf32>
    %88 = arith.divf %86, %87 : vector<16x1xf32>
    %89 = vector.broadcast %81 : vector<16x1xf32> to vector<16x32xf32>
    %90 = arith.subf %73, %89 : vector<16x32xf32>
    %cst_33 = arith.constant 9.99999974E-6 : f32
    %91 = vector.broadcast %cst_33 : f32 to vector<16x1xf32>
    %92 = arith.addf %88, %91 : vector<16x1xf32>
    %93 = math.rsqrt %92 : vector<16x1xf32>
    %94 = vector.broadcast %93 : vector<16x1xf32> to vector<16x32xf32>
    %95 = arith.mulf %90, %94 : vector<16x32xf32>
    %96 = vector.broadcast %75 : vector<1x32xf32> to vector<16x32xf32>
    %97 = arith.mulf %95, %96 : vector<16x32xf32>
    %98 = vector.broadcast %77 : vector<1x32xf32> to vector<16x32xf32>
    %99 = arith.addf %97, %98 : vector<16x32xf32>
    %c0_34 = arith.constant 0 : index
    %c0_35 = arith.constant 0 : index
    %c0_36 = arith.constant 0 : index
    %100 = vector.load %arg12[%c0_34, %c0_35, %c0_36] : memref<2x32x64xf32, #tpu.memory_space<vmem>>, vector<1x32x64xf32>
    %101 = vector.shape_cast %100 : vector<1x32x64xf32> to vector<32x64xf32>
    %cst_37 = arith.constant dense<0.000000e+00> : vector<16x64xf32>
    %102 = tpu.matmul %99, %101, %cst_37 {dimension_numbers = #tpu.dot_dimension_numbers<[1], [0], [0], [1], [0, 0, 1, 1], [], []>} : vector<16x32xf32>, vector<32x64xf32>, vector<16x64xf32> -> vector<16x64xf32>
    %c0_38 = arith.constant 0 : index
    %c0_39 = arith.constant 0 : index
    %c0_40 = arith.constant 0 : index
    %103 = vector.load %arg13[%c0_38, %c0_39, %c0_40] : memref<2x1x64xf32, #tpu.memory_space<vmem>>, vector<1x1x64xf32>
    %104 = vector.shape_cast %103 : vector<1x1x64xf32> to vector<1x64xf32>
    %105 = vector.broadcast %104 : vector<1x64xf32> to vector<16x64xf32>
    %106 = arith.addf %102, %105 : vector<16x64xf32>
    %cst_41 = arith.constant 0.000000e+00 : f32
    %107 = vector.broadcast %cst_41 : f32 to vector<16x64xf32>
    %108 = arith.maximumf %106, %107 : vector<16x64xf32>
    %c0_42 = arith.constant 0 : index
    %c0_43 = arith.constant 0 : index
    %c0_44 = arith.constant 0 : index
    %109 = vector.load %arg14[%c0_42, %c0_43, %c0_44] : memref<2x64x32xf32, #tpu.memory_space<vmem>>, vector<1x64x32xf32>
    %110 = vector.shape_cast %109 : vector<1x64x32xf32> to vector<64x32xf32>
    %cst_45 = arith.constant dense<0.000000e+00> : vector<16x32xf32>
    %111 = tpu.matmul %108, %110, %cst_45 {dimension_numbers = #tpu.dot_dimension_numbers<[1], [0], [0], [1], [0, 0, 1, 1], [], []>} : vector<16x64xf32>, vector<64x32xf32>, vector<16x32xf32> -> vector<16x32xf32>
    %c0_46 = arith.constant 0 : index
    %c0_47 = arith.constant 0 : index
    %c0_48 = arith.constant 0 : index
    %112 = vector.load %arg15[%c0_46, %c0_47, %c0_48] : memref<2x1x32xf32, #tpu.memory_space<vmem>>, vector<1x1x32xf32>
    %113 = vector.shape_cast %112 : vector<1x1x32xf32> to vector<1x32xf32>
    %114 = vector.broadcast %113 : vector<1x32xf32> to vector<16x32xf32>
    %115 = arith.addf %111, %114 : vector<16x32xf32>
    %116 = arith.addf %99, %115 : vector<16x32xf32>
    %c0_49 = arith.constant 0 : index
    %c0_50 = arith.constant 0 : index
    %c0_51 = arith.constant 0 : index
    %117 = vector.load %arg10[%c0_49, %c0_50, %c0_51] : memref<2x1x32xf32, #tpu.memory_space<vmem>>, vector<1x1x32xf32>
    %118 = vector.shape_cast %117 : vector<1x1x32xf32> to vector<1x32xf32>
    %c0_52 = arith.constant 0 : index
    %c0_53 = arith.constant 0 : index
    %c0_54 = arith.constant 0 : index
    %119 = vector.load %arg11[%c0_52, %c0_53, %c0_54] : memref<2x1x32xf32, #tpu.memory_space<vmem>>, vector<1x1x32xf32>
    %120 = vector.shape_cast %119 : vector<1x1x32xf32> to vector<1x32xf32>
    %cst_55 = arith.constant dense<0.000000e+00> : vector<16xf32>
    %121 = vector.multi_reduction <add>, %116, %cst_55 [1] : vector<16x32xf32> to vector<16xf32>
    %122 = vector.shape_cast %121 : vector<16xf32> to vector<16x1xf32>
    %cst_56 = arith.constant 3.200000e+01 : f32
    %123 = vector.broadcast %cst_56 : f32 to vector<16x1xf32>
    %124 = arith.divf %122, %123 : vector<16x1xf32>
    %125 = vector.broadcast %124 : vector<16x1xf32> to vector<16x32xf32>
    %126 = arith.subf %116, %125 : vector<16x32xf32>
    %127 = arith.mulf %126, %126 : vector<16x32xf32>
    %cst_57 = arith.constant dense<0.000000e+00> : vector<16xf32>
    %128 = vector.multi_reduction <add>, %127, %cst_57 [1] : vector<16x32xf32> to vector<16xf32>
    %129 = vector.shape_cast %128 : vector<16xf32> to vector<16x1xf32>
    %cst_58 = arith.constant 3.200000e+01 : f32
    %130 = vector.broadcast %cst_58 : f32 to vector<16x1xf32>
    %131 = arith.divf %129, %130 : vector<16x1xf32>
    %132 = vector.broadcast %124 : vector<16x1xf32> to vector<16x32xf32>
    %133 = arith.subf %116, %132 : vector<16x32xf32>
    %cst_59 = arith.constant 9.99999974E-6 : f32
    %134 = vector.broadcast %cst_59 : f32 to vector<16x1xf32>
    %135 = arith.addf %131, %134 : vector<16x1xf32>
    %136 = math.rsqrt %135 : vector<16x1xf32>
    %137 = vector.broadcast %136 : vector<16x1xf32> to vector<16x32xf32>
    %138 = arith.mulf %133, %137 : vector<16x32xf32>
    %139 = vector.broadcast %118 : vector<1x32xf32> to vector<16x32xf32>
    %140 = arith.mulf %138, %139 : vector<16x32xf32>
    %141 = vector.broadcast %120 : vector<1x32xf32> to vector<16x32xf32>
    %142 = arith.addf %140, %141 : vector<16x32xf32>
    %c1 = arith.constant 1 : index
    %c0_60 = arith.constant 0 : index
    %c0_61 = arith.constant 0 : index
    %143 = vector.load %arg4[%c1, %c0_60, %c0_61] : memref<2x32x96xf32, #tpu.memory_space<vmem>>, vector<1x32x96xf32>
    %144 = vector.shape_cast %143 : vector<1x32x96xf32> to vector<32x96xf32>
    %cst_62 = arith.constant dense<0.000000e+00> : vector<16x96xf32>
    %145 = tpu.matmul %142, %144, %cst_62 {dimension_numbers = #tpu.dot_dimension_numbers<[1], [0], [0], [1], [0, 0, 1, 1], [], []>} : vector<16x32xf32>, vector<32x96xf32>, vector<16x96xf32> -> vector<16x96xf32>
    %c1_63 = arith.constant 1 : index
    %c0_64 = arith.constant 0 : index
    %c0_65 = arith.constant 0 : index
    %146 = vector.load %arg5[%c1_63, %c0_64, %c0_65] : memref<2x1x96xf32, #tpu.memory_space<vmem>>, vector<1x1x96xf32>
    %147 = vector.shape_cast %146 : vector<1x1x96xf32> to vector<1x96xf32>
    %148 = vector.broadcast %147 : vector<1x96xf32> to vector<16x96xf32>
    %149 = arith.addf %145, %148 : vector<16x96xf32>
    %150 = vector.extract_strided_slice %149 {offsets = [0, 0], sizes = [16, 8], strides = [1, 1]} : vector<16x96xf32> to vector<16x8xf32>
    %151 = vector.shape_cast %150 : vector<16x8xf32> to vector<2x8x8xf32>
    %152 = vector.extract_strided_slice %149 {offsets = [0, 8], sizes = [16, 8], strides = [1, 1]} : vector<16x96xf32> to vector<16x8xf32>
    %153 = vector.shape_cast %152 : vector<16x8xf32> to vector<2x8x8xf32>
    %154 = vector.extract_strided_slice %149 {offsets = [0, 16], sizes = [16, 8], strides = [1, 1]} : vector<16x96xf32> to vector<16x8xf32>
    %155 = vector.shape_cast %154 : vector<16x8xf32> to vector<2x8x8xf32>
    %156 = vector.extract_strided_slice %149 {offsets = [0, 24], sizes = [16, 8], strides = [1, 1]} : vector<16x96xf32> to vector<16x8xf32>
    %157 = vector.shape_cast %156 : vector<16x8xf32> to vector<2x8x8xf32>
    %158 = tpu.concatenate %151, %153, %155, %157 in 0 : vector<2x8x8xf32>, vector<2x8x8xf32>, vector<2x8x8xf32>, vector<2x8x8xf32> -> vector<8x8x8xf32>
    %159 = vector.extract_strided_slice %149 {offsets = [0, 32], sizes = [16, 8], strides = [1, 1]} : vector<16x96xf32> to vector<16x8xf32>
    %160 = vector.shape_cast %159 : vector<16x8xf32> to vector<2x8x8xf32>
    %161 = vector.extract_strided_slice %149 {offsets = [0, 40], sizes = [16, 8], strides = [1, 1]} : vector<16x96xf32> to vector<16x8xf32>
    %162 = vector.shape_cast %161 : vector<16x8xf32> to vector<2x8x8xf32>
    %163 = vector.extract_strided_slice %149 {offsets = [0, 48], sizes = [16, 8], strides = [1, 1]} : vector<16x96xf32> to vector<16x8xf32>
    %164 = vector.shape_cast %163 : vector<16x8xf32> to vector<2x8x8xf32>
    %165 = vector.extract_strided_slice %149 {offsets = [0, 56], sizes = [16, 8], strides = [1, 1]} : vector<16x96xf32> to vector<16x8xf32>
    %166 = vector.shape_cast %165 : vector<16x8xf32> to vector<2x8x8xf32>
    %167 = tpu.concatenate %160, %162, %164, %166 in 0 : vector<2x8x8xf32>, vector<2x8x8xf32>, vector<2x8x8xf32>, vector<2x8x8xf32> -> vector<8x8x8xf32>
    %168 = vector.extract_strided_slice %149 {offsets = [0, 64], sizes = [16, 8], strides = [1, 1]} : vector<16x96xf32> to vector<16x8xf32>
    %169 = vector.shape_cast %168 : vector<16x8xf32> to vector<2x8x8xf32>
    %170 = vector.extract_strided_slice %149 {offsets = [0, 72], sizes = [16, 8], strides = [1, 1]} : vector<16x96xf32> to vector<16x8xf32>
    %171 = vector.shape_cast %170 : vector<16x8xf32> to vector<2x8x8xf32>
    %172 = vector.extract_strided_slice %149 {offsets = [0, 80], sizes = [16, 8], strides = [1, 1]} : vector<16x96xf32> to vector<16x8xf32>
    %173 = vector.shape_cast %172 : vector<16x8xf32> to vector<2x8x8xf32>
    %174 = vector.extract_strided_slice %149 {offsets = [0, 88], sizes = [16, 8], strides = [1, 1]} : vector<16x96xf32> to vector<16x8xf32>
    %175 = vector.shape_cast %174 : vector<16x8xf32> to vector<2x8x8xf32>
    %176 = tpu.concatenate %169, %171, %173, %175 in 0 : vector<2x8x8xf32>, vector<2x8x8xf32>, vector<2x8x8xf32>, vector<2x8x8xf32> -> vector<8x8x8xf32>
    "tpu.trace_start"() <{level = 10 : i32, message = "gld,gmd->glm"}> : () -> ()
    %cst_66 = arith.constant dense<0.000000e+00> : vector<8x8x8xf32>
    %177 = tpu.matmul %158, %167, %cst_66 {dimension_numbers = #tpu.dot_dimension_numbers<[2], [2], [1], [1], [0, 0, 0, 1, 1, 1], [0], [0]>} : vector<8x8x8xf32>, vector<8x8x8xf32>, vector<8x8x8xf32> -> vector<8x8x8xf32>
    "tpu.trace_stop"() : () -> ()
    %cst_67 = arith.constant dense<0xFF800000> : vector<8x8xf32>
    %178 = vector.multi_reduction <maximumf>, %177, %cst_67 [2] : vector<8x8x8xf32> to vector<8x8xf32>
    %179 = vector.shape_cast %178 : vector<8x8xf32> to vector<8x8x1xf32>
    %180 = vector.broadcast %179 : vector<8x8x1xf32> to vector<8x8x8xf32>
    %181 = arith.subf %177, %180 : vector<8x8x8xf32>
    %182 = math.exp %181 : vector<8x8x8xf32>
    %cst_68 = arith.constant dense<0.000000e+00> : vector<8x8xf32>
    %183 = vector.multi_reduction <add>, %182, %cst_68 [2] : vector<8x8x8xf32> to vector<8x8xf32>
    %184 = vector.shape_cast %183 : vector<8x8xf32> to vector<8x8x1xf32>
    %185 = tpu.reciprocal %184 {approx = true} : vector<8x8x1xf32> -> vector<8x8x1xf32>
    %186 = vector.broadcast %185 : vector<8x8x1xf32> to vector<8x8x8xf32>
    %187 = arith.mulf %182, %186 : vector<8x8x8xf32>
    "tpu.trace_start"() <{level = 10 : i32, message = "glm,gmd->gld"}> : () -> ()
    %cst_69 = arith.constant dense<0.000000e+00> : vector<8x8x8xf32>
    %188 = tpu.matmul %187, %176, %cst_69 {dimension_numbers = #tpu.dot_dimension_numbers<[2], [1], [1], [2], [0, 0, 0, 1, 1, 2], [0], [0]>} : vector<8x8x8xf32>, vector<8x8x8xf32>, vector<8x8x8xf32> -> vector<8x8x8xf32>
    "tpu.trace_stop"() : () -> ()
    %189 = vector.extract_strided_slice %188 {offsets = [0, 0, 0], sizes = [2, 8, 8], strides = [1, 1, 1]} : vector<8x8x8xf32> to vector<2x8x8xf32>
    %190 = vector.shape_cast %189 : vector<2x8x8xf32> to vector<16x8xf32>
    %191 = vector.extract_strided_slice %188 {offsets = [2, 0, 0], sizes = [2, 8, 8], strides = [1, 1, 1]} : vector<8x8x8xf32> to vector<2x8x8xf32>
    %192 = vector.shape_cast %191 : vector<2x8x8xf32> to vector<16x8xf32>
    %193 = vector.extract_strided_slice %188 {offsets = [4, 0, 0], sizes = [2, 8, 8], strides = [1, 1, 1]} : vector<8x8x8xf32> to vector<2x8x8xf32>
    %194 = vector.shape_cast %193 : vector<2x8x8xf32> to vector<16x8xf32>
    %195 = vector.extract_strided_slice %188 {offsets = [6, 0, 0], sizes = [2, 8, 8], strides = [1, 1, 1]} : vector<8x8x8xf32> to vector<2x8x8xf32>
    %196 = vector.shape_cast %195 : vector<2x8x8xf32> to vector<16x8xf32>
    %197 = tpu.concatenate %190, %192, %194, %196 in 1 : vector<16x8xf32>, vector<16x8xf32>, vector<16x8xf32>, vector<16x8xf32> -> vector<16x32xf32>
    %c1_70 = arith.constant 1 : index
    %c0_71 = arith.constant 0 : index
    %c0_72 = arith.constant 0 : index
    %198 = vector.load %arg6[%c1_70, %c0_71, %c0_72] : memref<2x32x32xf32, #tpu.memory_space<vmem>>, vector<1x32x32xf32>
    %199 = vector.shape_cast %198 : vector<1x32x32xf32> to vector<32x32xf32>
    %cst_73 = arith.constant dense<0.000000e+00> : vector<16x32xf32>
    %200 = tpu.matmul %197, %199, %cst_73 {dimension_numbers = #tpu.dot_dimension_numbers<[1], [0], [0], [1], [0, 0, 1, 1], [], []>} : vector<16x32xf32>, vector<32x32xf32>, vector<16x32xf32> -> vector<16x32xf32>
    %c1_74 = arith.constant 1 : index
    %c0_75 = arith.constant 0 : index
    %c0_76 = arith.constant 0 : index
    %201 = vector.load %arg7[%c1_74, %c0_75, %c0_76] : memref<2x1x32xf32, #tpu.memory_space<vmem>>, vector<1x1x32xf32>
    %202 = vector.shape_cast %201 : vector<1x1x32xf32> to vector<1x32xf32>
    %203 = vector.broadcast %202 : vector<1x32xf32> to vector<16x32xf32>
    %204 = arith.addf %200, %203 : vector<16x32xf32>
    %205 = arith.addf %142, %204 : vector<16x32xf32>
    %c1_77 = arith.constant 1 : index
    %c0_78 = arith.constant 0 : index
    %c0_79 = arith.constant 0 : index
    %206 = vector.load %arg8[%c1_77, %c0_78, %c0_79] : memref<2x1x32xf32, #tpu.memory_space<vmem>>, vector<1x1x32xf32>
    %207 = vector.shape_cast %206 : vector<1x1x32xf32> to vector<1x32xf32>
    %c1_80 = arith.constant 1 : index
    %c0_81 = arith.constant 0 : index
    %c0_82 = arith.constant 0 : index
    %208 = vector.load %arg9[%c1_80, %c0_81, %c0_82] : memref<2x1x32xf32, #tpu.memory_space<vmem>>, vector<1x1x32xf32>
    %209 = vector.shape_cast %208 : vector<1x1x32xf32> to vector<1x32xf32>
    %cst_83 = arith.constant dense<0.000000e+00> : vector<16xf32>
    %210 = vector.multi_reduction <add>, %205, %cst_83 [1] : vector<16x32xf32> to vector<16xf32>
    %211 = vector.shape_cast %210 : vector<16xf32> to vector<16x1xf32>
    %cst_84 = arith.constant 3.200000e+01 : f32
    %212 = vector.broadcast %cst_84 : f32 to vector<16x1xf32>
    %213 = arith.divf %211, %212 : vector<16x1xf32>
    %214 = vector.broadcast %213 : vector<16x1xf32> to vector<16x32xf32>
    %215 = arith.subf %205, %214 : vector<16x32xf32>
    %216 = arith.mulf %215, %215 : vector<16x32xf32>
    %cst_85 = arith.constant dense<0.000000e+00> : vector<16xf32>
    %217 = vector.multi_reduction <add>, %216, %cst_85 [1] : vector<16x32xf32> to vector<16xf32>
    %218 = vector.shape_cast %217 : vector<16xf32> to vector<16x1xf32>
    %cst_86 = arith.constant 3.200000e+01 : f32
    %219 = vector.broadcast %cst_86 : f32 to vector<16x1xf32>
    %220 = arith.divf %218, %219 : vector<16x1xf32>
    %221 = vector.broadcast %213 : vector<16x1xf32> to vector<16x32xf32>
    %222 = arith.subf %205, %221 : vector<16x32xf32>
    %cst_87 = arith.constant 9.99999974E-6 : f32
    %223 = vector.broadcast %cst_87 : f32 to vector<16x1xf32>
    %224 = arith.addf %220, %223 : vector<16x1xf32>
    %225 = math.rsqrt %224 : vector<16x1xf32>
    %226 = vector.broadcast %225 : vector<16x1xf32> to vector<16x32xf32>
    %227 = arith.mulf %222, %226 : vector<16x32xf32>
    %228 = vector.broadcast %207 : vector<1x32xf32> to vector<16x32xf32>
    %229 = arith.mulf %227, %228 : vector<16x32xf32>
    %230 = vector.broadcast %209 : vector<1x32xf32> to vector<16x32xf32>
    %231 = arith.addf %229, %230 : vector<16x32xf32>
    %c1_88 = arith.constant 1 : index
    %c0_89 = arith.constant 0 : index
    %c0_90 = arith.constant 0 : index
    %232 = vector.load %arg12[%c1_88, %c0_89, %c0_90] : memref<2x32x64xf32, #tpu.memory_space<vmem>>, vector<1x32x64xf32>
    %233 = vector.shape_cast %232 : vector<1x32x64xf32> to vector<32x64xf32>
    %cst_91 = arith.constant dense<0.000000e+00> : vector<16x64xf32>
    %234 = tpu.matmul %231, %233, %cst_91 {dimension_numbers = #tpu.dot_dimension_numbers<[1], [0], [0], [1], [0, 0, 1, 1], [], []>} : vector<16x32xf32>, vector<32x64xf32>, vector<16x64xf32> -> vector<16x64xf32>
    %c1_92 = arith.constant 1 : index
    %c0_93 = arith.constant 0 : index
    %c0_94 = arith.constant 0 : index
    %235 = vector.load %arg13[%c1_92, %c0_93, %c0_94] : memref<2x1x64xf32, #tpu.memory_space<vmem>>, vector<1x1x64xf32>
    %236 = vector.shape_cast %235 : vector<1x1x64xf32> to vector<1x64xf32>
    %237 = vector.broadcast %236 : vector<1x64xf32> to vector<16x64xf32>
    %238 = arith.addf %234, %237 : vector<16x64xf32>
    %cst_95 = arith.constant 0.000000e+00 : f32
    %239 = vector.broadcast %cst_95 : f32 to vector<16x64xf32>
    %240 = arith.maximumf %238, %239 : vector<16x64xf32>
    %c1_96 = arith.constant 1 : index
    %c0_97 = arith.constant 0 : index
    %c0_98 = arith.constant 0 : index
    %241 = vector.load %arg14[%c1_96, %c0_97, %c0_98] : memref<2x64x32xf32, #tpu.memory_space<vmem>>, vector<1x64x32xf32>
    %242 = vector.shape_cast %241 : vector<1x64x32xf32> to vector<64x32xf32>
    %cst_99 = arith.constant dense<0.000000e+00> : vector<16x32xf32>
    %243 = tpu.matmul %240, %242, %cst_99 {dimension_numbers = #tpu.dot_dimension_numbers<[1], [0], [0], [1], [0, 0, 1, 1], [], []>} : vector<16x64xf32>, vector<64x32xf32>, vector<16x32xf32> -> vector<16x32xf32>
    %c1_100 = arith.constant 1 : index
    %c0_101 = arith.constant 0 : index
    %c0_102 = arith.constant 0 : index
    %244 = vector.load %arg15[%c1_100, %c0_101, %c0_102] : memref<2x1x32xf32, #tpu.memory_space<vmem>>, vector<1x1x32xf32>
    %245 = vector.shape_cast %244 : vector<1x1x32xf32> to vector<1x32xf32>
    %246 = vector.broadcast %245 : vector<1x32xf32> to vector<16x32xf32>
    %247 = arith.addf %243, %246 : vector<16x32xf32>
    %248 = arith.addf %231, %247 : vector<16x32xf32>
    %c1_103 = arith.constant 1 : index
    %c0_104 = arith.constant 0 : index
    %c0_105 = arith.constant 0 : index
    %249 = vector.load %arg10[%c1_103, %c0_104, %c0_105] : memref<2x1x32xf32, #tpu.memory_space<vmem>>, vector<1x1x32xf32>
    %250 = vector.shape_cast %249 : vector<1x1x32xf32> to vector<1x32xf32>
    %c1_106 = arith.constant 1 : index
    %c0_107 = arith.constant 0 : index
    %c0_108 = arith.constant 0 : index
    %251 = vector.load %arg11[%c1_106, %c0_107, %c0_108] : memref<2x1x32xf32, #tpu.memory_space<vmem>>, vector<1x1x32xf32>
    %252 = vector.shape_cast %251 : vector<1x1x32xf32> to vector<1x32xf32>
    %cst_109 = arith.constant dense<0.000000e+00> : vector<16xf32>
    %253 = vector.multi_reduction <add>, %248, %cst_109 [1] : vector<16x32xf32> to vector<16xf32>
    %254 = vector.shape_cast %253 : vector<16xf32> to vector<16x1xf32>
    %cst_110 = arith.constant 3.200000e+01 : f32
    %255 = vector.broadcast %cst_110 : f32 to vector<16x1xf32>
    %256 = arith.divf %254, %255 : vector<16x1xf32>
    %257 = vector.broadcast %256 : vector<16x1xf32> to vector<16x32xf32>
    %258 = arith.subf %248, %257 : vector<16x32xf32>
    %259 = arith.mulf %258, %258 : vector<16x32xf32>
    %cst_111 = arith.constant dense<0.000000e+00> : vector<16xf32>
    %260 = vector.multi_reduction <add>, %259, %cst_111 [1] : vector<16x32xf32> to vector<16xf32>
    %261 = vector.shape_cast %260 : vector<16xf32> to vector<16x1xf32>
    %cst_112 = arith.constant 3.200000e+01 : f32
    %262 = vector.broadcast %cst_112 : f32 to vector<16x1xf32>
    %263 = arith.divf %261, %262 : vector<16x1xf32>
    %264 = vector.broadcast %256 : vector<16x1xf32> to vector<16x32xf32>
    %265 = arith.subf %248, %264 : vector<16x32xf32>
    %cst_113 = arith.constant 9.99999974E-6 : f32
    %266 = vector.broadcast %cst_113 : f32 to vector<16x1xf32>
    %267 = arith.addf %263, %266 : vector<16x1xf32>
    %268 = math.rsqrt %267 : vector<16x1xf32>
    %269 = vector.broadcast %268 : vector<16x1xf32> to vector<16x32xf32>
    %270 = arith.mulf %265, %269 : vector<16x32xf32>
    %271 = vector.broadcast %250 : vector<1x32xf32> to vector<16x32xf32>
    %272 = arith.mulf %270, %271 : vector<16x32xf32>
    %273 = vector.broadcast %252 : vector<1x32xf32> to vector<16x32xf32>
    %274 = arith.addf %272, %273 : vector<16x32xf32>
    %275 = vector.shape_cast %274 : vector<16x32xf32> to vector<2x8x32xf32>
    %276 = vector.extract_strided_slice %275 {offsets = [0, 0, 0], sizes = [2, 1, 32], strides = [1, 1, 1]} : vector<2x8x32xf32> to vector<2x1x32xf32>
    %277 = vector.shape_cast %276 : vector<2x1x32xf32> to vector<2x32xf32>
    %278 = vector.extract_strided_slice %275 {offsets = [0, 1, 0], sizes = [2, 1, 32], strides = [1, 1, 1]} : vector<2x8x32xf32> to vector<2x1x32xf32>
    %279 = vector.shape_cast %278 : vector<2x1x32xf32> to vector<2x32xf32>
    %280 = vector.extract_strided_slice %275 {offsets = [0, 2, 0], sizes = [2, 1, 32], strides = [1, 1, 1]} : vector<2x8x32xf32> to vector<2x1x32xf32>
    %281 = vector.shape_cast %280 : vector<2x1x32xf32> to vector<2x32xf32>
    %282 = vector.extract_strided_slice %275 {offsets = [0, 3, 0], sizes = [2, 1, 32], strides = [1, 1, 1]} : vector<2x8x32xf32> to vector<2x1x32xf32>
    %283 = vector.shape_cast %282 : vector<2x1x32xf32> to vector<2x32xf32>
    %284 = vector.extract_strided_slice %275 {offsets = [0, 4, 0], sizes = [2, 1, 32], strides = [1, 1, 1]} : vector<2x8x32xf32> to vector<2x1x32xf32>
    %285 = vector.shape_cast %284 : vector<2x1x32xf32> to vector<2x32xf32>
    %286 = vector.extract_strided_slice %275 {offsets = [0, 5, 0], sizes = [2, 1, 32], strides = [1, 1, 1]} : vector<2x8x32xf32> to vector<2x1x32xf32>
    %287 = vector.shape_cast %286 : vector<2x1x32xf32> to vector<2x32xf32>
    %288 = vector.extract_strided_slice %275 {offsets = [0, 6, 0], sizes = [2, 1, 32], strides = [1, 1, 1]} : vector<2x8x32xf32> to vector<2x1x32xf32>
    %289 = vector.shape_cast %288 : vector<2x1x32xf32> to vector<2x32xf32>
    %290 = vector.extract_strided_slice %275 {offsets = [0, 7, 0], sizes = [2, 1, 32], strides = [1, 1, 1]} : vector<2x8x32xf32> to vector<2x1x32xf32>
    %291 = vector.shape_cast %290 : vector<2x1x32xf32> to vector<2x32xf32>
    %292 = tpu.concatenate %277, %279, %281, %283, %285, %287, %289, %291 in 1 : vector<2x32xf32>, vector<2x32xf32>, vector<2x32xf32>, vector<2x32xf32>, vector<2x32xf32>, vector<2x32xf32>, vector<2x32xf32>, vector<2x32xf32> -> vector<2x256xf32>
    %c0_114 = arith.constant 0 : index
    %c0_115 = arith.constant 0 : index
    %293 = vector.load %arg16[%c0_114, %c0_115] : memref<256x32xf32, #tpu.memory_space<vmem>>, vector<256x32xf32>
    %cst_116 = arith.constant dense<0.000000e+00> : vector<2x32xf32>
    %294 = tpu.matmul %292, %293, %cst_116 {dimension_numbers = #tpu.dot_dimension_numbers<[1], [0], [0], [1], [0, 0, 1, 1], [], []>} : vector<2x256xf32>, vector<256x32xf32>, vector<2x32xf32> -> vector<2x32xf32>
    %c0_117 = arith.constant 0 : index
    %c0_118 = arith.constant 0 : index
    %295 = vector.load %arg17[%c0_117, %c0_118] : memref<1x32xf32, #tpu.memory_space<vmem>>, vector<1x32xf32>
    %296 = vector.broadcast %295 : vector<1x32xf32> to vector<2x32xf32>
    %297 = arith.addf %294, %296 : vector<2x32xf32>
    %cst_119 = arith.constant 0.000000e+00 : f32
    %298 = vector.broadcast %cst_119 : f32 to vector<2x32xf32>
    %299 = arith.maximumf %297, %298 : vector<2x32xf32>
    %c0_120 = arith.constant 0 : index
    %c0_121 = arith.constant 0 : index
    %300 = vector.load %arg18[%c0_120, %c0_121] : memref<32x64xf32, #tpu.memory_space<vmem>>, vector<32x64xf32>
    %cst_122 = arith.constant dense<0.000000e+00> : vector<2x64xf32>
    %301 = tpu.matmul %299, %300, %cst_122 {dimension_numbers = #tpu.dot_dimension_numbers<[1], [0], [0], [1], [0, 0, 1, 1], [], []>} : vector<2x32xf32>, vector<32x64xf32>, vector<2x64xf32> -> vector<2x64xf32>
    %c0_123 = arith.constant 0 : index
    %c0_124 = arith.constant 0 : index
    %302 = vector.load %arg19[%c0_123, %c0_124] : memref<1x64xf32, #tpu.memory_space<vmem>>, vector<1x64xf32>
    %303 = vector.broadcast %302 : vector<1x64xf32> to vector<2x64xf32>
    %304 = arith.addf %301, %303 : vector<2x64xf32>
    %cst_125 = arith.constant 0.000000e+00 : f32
    %305 = vector.broadcast %cst_125 : f32 to vector<2x64xf32>
    %306 = arith.maximumf %304, %305 : vector<2x64xf32>
    %c0_126 = arith.constant 0 : index
    %c0_127 = arith.constant 0 : index
    %307 = vector.load %arg20[%c0_126, %c0_127] : memref<64x32xf32, #tpu.memory_space<vmem>>, vector<64x32xf32>
    %cst_128 = arith.constant dense<0.000000e+00> : vector<2x32xf32>
    %308 = tpu.matmul %306, %307, %cst_128 {dimension_numbers = #tpu.dot_dimension_numbers<[1], [0], [0], [1], [0, 0, 1, 1], [], []>} : vector<2x64xf32>, vector<64x32xf32>, vector<2x32xf32> -> vector<2x32xf32>
    %c0_129 = arith.constant 0 : index
    %c0_130 = arith.constant 0 : index
    %309 = vector.load %arg21[%c0_129, %c0_130] : memref<1x32xf32, #tpu.memory_space<vmem>>, vector<1x32xf32>
    %310 = vector.broadcast %309 : vector<1x32xf32> to vector<2x32xf32>
    %311 = arith.addf %308, %310 : vector<2x32xf32>
    %cst_131 = arith.constant 0.000000e+00 : f32
    %312 = vector.broadcast %cst_131 : f32 to vector<2x32xf32>
    %313 = arith.maximumf %311, %312 : vector<2x32xf32>
    %c0_132 = arith.constant 0 : index
    %c0_133 = arith.constant 0 : index
    %314 = vector.load %arg22[%c0_132, %c0_133] : memref<32x4xf32, #tpu.memory_space<vmem>>, vector<32x4xf32>
    %cst_134 = arith.constant dense<0.000000e+00> : vector<2x4xf32>
    %315 = tpu.matmul %313, %314, %cst_134 {dimension_numbers = #tpu.dot_dimension_numbers<[1], [0], [0], [1], [0, 0, 1, 1], [], []>} : vector<2x32xf32>, vector<32x4xf32>, vector<2x4xf32> -> vector<2x4xf32>
    %c0_135 = arith.constant 0 : index
    %c0_136 = arith.constant 0 : index
    %316 = vector.load %arg23[%c0_135, %c0_136] : memref<1x4xf32, #tpu.memory_space<vmem>>, vector<1x4xf32>
    %317 = vector.broadcast %316 : vector<1x4xf32> to vector<2x4xf32>
    %318 = arith.addf %315, %317 : vector<2x4xf32>
    %c0_137 = arith.constant 0 : index
    %c0_138 = arith.constant 0 : index
    %319 = vector.load %arg24[%c0_137, %c0_138] : memref<2x4xf32, #tpu.memory_space<vmem>>, vector<2x4xf32>
    tpu.vector_store %arg24[%c0_137, %c0_138], %318 {strides = array<i32>} : memref<2x4xf32, #tpu.memory_space<vmem>>, vector<2x4xf32>,
    return
  }
  func.func @transform_0(%arg0: i32) -> (i32, i32) {
    %c0_i32 = arith.constant 0 : i32
    %c0_i32_0 = arith.constant 0 : i32
    %c0_i32_1 = arith.constant 0 : i32
    return %c0_i32, %c0_i32_0 : i32, i32
  }
  func.func @transform_1(%arg0: i32) -> (i32, i32) {
    %c0_i32 = arith.constant 0 : i32
    %c0_i32_0 = arith.constant 0 : i32
    %c0_i32_1 = arith.constant 0 : i32
    return %c0_i32, %c0_i32_0 : i32, i32
  }
  func.func @transform_2(%arg0: i32) -> (i32, i32) {
    %c0_i32 = arith.constant 0 : i32
    %c0_i32_0 = arith.constant 0 : i32
    %c0_i32_1 = arith.constant 0 : i32
    return %c0_i32, %c0_i32_0 : i32, i32
  }
  func.func @transform_3(%arg0: i32) -> (i32, i32, i32) {
    %c0_i32 = arith.constant 0 : i32
    %c0_i32_0 = arith.constant 0 : i32
    %c0_i32_1 = arith.constant 0 : i32
    %c0_i32_2 = arith.constant 0 : i32
    return %c0_i32, %c0_i32_0, %c0_i32_1 : i32, i32, i32
  }
  func.func @transform_4(%arg0: i32) -> (i32, i32, i32) {
    %c0_i32 = arith.constant 0 : i32
    %c0_i32_0 = arith.constant 0 : i32
    %c0_i32_1 = arith.constant 0 : i32
    %c0_i32_2 = arith.constant 0 : i32
    return %c0_i32, %c0_i32_0, %c0_i32_1 : i32, i32, i32
  }
  func.func @transform_5(%arg0: i32) -> (i32, i32, i32) {
    %c0_i32 = arith.constant 0 : i32
    %c0_i32_0 = arith.constant 0 : i32
    %c0_i32_1 = arith.constant 0 : i32
    %c0_i32_2 = arith.constant 0 : i32
    return %c0_i32, %c0_i32_0, %c0_i32_1 : i32, i32, i32
  }
  func.func @transform_6(%arg0: i32) -> (i32, i32, i32) {
    %c0_i32 = arith.constant 0 : i32
    %c0_i32_0 = arith.constant 0 : i32
    %c0_i32_1 = arith.constant 0 : i32
    %c0_i32_2 = arith.constant 0 : i32
    return %c0_i32, %c0_i32_0, %c0_i32_1 : i32, i32, i32
  }
  func.func @transform_7(%arg0: i32) -> (i32, i32, i32) {
    %c0_i32 = arith.constant 0 : i32
    %c0_i32_0 = arith.constant 0 : i32
    %c0_i32_1 = arith.constant 0 : i32
    %c0_i32_2 = arith.constant 0 : i32
    return %c0_i32, %c0_i32_0, %c0_i32_1 : i32, i32, i32
  }
  func.func @transform_8(%arg0: i32) -> (i32, i32, i32) {
    %c0_i32 = arith.constant 0 : i32
    %c0_i32_0 = arith.constant 0 : i32
    %c0_i32_1 = arith.constant 0 : i32
    %c0_i32_2 = arith.constant 0 : i32
    return %c0_i32, %c0_i32_0, %c0_i32_1 : i32, i32, i32
  }
  func.func @transform_9(%arg0: i32) -> (i32, i32, i32) {
    %c0_i32 = arith.constant 0 : i32
    %c0_i32_0 = arith.constant 0 : i32
    %c0_i32_1 = arith.constant 0 : i32
    %c0_i32_2 = arith.constant 0 : i32
    return %c0_i32, %c0_i32_0, %c0_i32_1 : i32, i32, i32
  }
  func.func @transform_10(%arg0: i32) -> (i32, i32, i32) {
    %c0_i32 = arith.constant 0 : i32
    %c0_i32_0 = arith.constant 0 : i32
    %c0_i32_1 = arith.constant 0 : i32
    %c0_i32_2 = arith.constant 0 : i32
    return %c0_i32, %c0_i32_0, %c0_i32_1 : i32, i32, i32
  }
  func.func @transform_11(%arg0: i32) -> (i32, i32, i32) {
    %c0_i32 = arith.constant 0 : i32
    %c0_i32_0 = arith.constant 0 : i32
    %c0_i32_1 = arith.constant 0 : i32
    %c0_i32_2 = arith.constant 0 : i32
    return %c0_i32, %c0_i32_0, %c0_i32_1 : i32, i32, i32
  }
  func.func @transform_12(%arg0: i32) -> (i32, i32, i32) {
    %c0_i32 = arith.constant 0 : i32
    %c0_i32_0 = arith.constant 0 : i32
    %c0_i32_1 = arith.constant 0 : i32
    %c0_i32_2 = arith.constant 0 : i32
    return %c0_i32, %c0_i32_0, %c0_i32_1 : i32, i32, i32
  }
  func.func @transform_13(%arg0: i32) -> (i32, i32, i32) {
    %c0_i32 = arith.constant 0 : i32
    %c0_i32_0 = arith.constant 0 : i32
    %c0_i32_1 = arith.constant 0 : i32
    %c0_i32_2 = arith.constant 0 : i32
    return %c0_i32, %c0_i32_0, %c0_i32_1 : i32, i32, i32
  }
  func.func @transform_14(%arg0: i32) -> (i32, i32, i32) {
    %c0_i32 = arith.constant 0 : i32
    %c0_i32_0 = arith.constant 0 : i32
    %c0_i32_1 = arith.constant 0 : i32
    %c0_i32_2 = arith.constant 0 : i32
    return %c0_i32, %c0_i32_0, %c0_i32_1 : i32, i32, i32
  }
  func.func @transform_15(%arg0: i32) -> (i32, i32) {
    %c0_i32 = arith.constant 0 : i32
    %c0_i32_0 = arith.constant 0 : i32
    %c0_i32_1 = arith.constant 0 : i32
    return %c0_i32, %c0_i32_0 : i32, i32
  }
  func.func @transform_16(%arg0: i32) -> (i32, i32) {
    %c0_i32 = arith.constant 0 : i32
    %c0_i32_0 = arith.constant 0 : i32
    %c0_i32_1 = arith.constant 0 : i32
    return %c0_i32, %c0_i32_0 : i32, i32
  }
  func.func @transform_17(%arg0: i32) -> (i32, i32) {
    %c0_i32 = arith.constant 0 : i32
    %c0_i32_0 = arith.constant 0 : i32
    %c0_i32_1 = arith.constant 0 : i32
    return %c0_i32, %c0_i32_0 : i32, i32
  }
  func.func @transform_18(%arg0: i32) -> (i32, i32) {
    %c0_i32 = arith.constant 0 : i32
    %c0_i32_0 = arith.constant 0 : i32
    %c0_i32_1 = arith.constant 0 : i32
    return %c0_i32, %c0_i32_0 : i32, i32
  }
  func.func @transform_19(%arg0: i32) -> (i32, i32) {
    %c0_i32 = arith.constant 0 : i32
    %c0_i32_0 = arith.constant 0 : i32
    %c0_i32_1 = arith.constant 0 : i32
    return %c0_i32, %c0_i32_0 : i32, i32
  }
  func.func @transform_20(%arg0: i32) -> (i32, i32) {
    %c0_i32 = arith.constant 0 : i32
    %c0_i32_0 = arith.constant 0 : i32
    %c0_i32_1 = arith.constant 0 : i32
    return %c0_i32, %c0_i32_0 : i32, i32
  }
  func.func @transform_21(%arg0: i32) -> (i32, i32) {
    %c0_i32 = arith.constant 0 : i32
    %c0_i32_0 = arith.constant 0 : i32
    %c0_i32_1 = arith.constant 0 : i32
    return %c0_i32, %c0_i32_0 : i32, i32
  }
  func.func @transform_22(%arg0: i32) -> (i32, i32) {
    %c0_i32 = arith.constant 0 : i32
    %c0_i32_0 = arith.constant 0 : i32
    %c0_i32_1 = arith.constant 0 : i32
    return %c0_i32, %c0_i32_0 : i32, i32
  }
  func.func @transform_23(%arg0: i32) -> (i32, i32) {
    %c0_i32 = arith.constant 0 : i32
    %c0_i32_0 = arith.constant 0 : i32
    %c0_i32_1 = arith.constant 0 : i32
    return %c0_i32, %c0_i32_0 : i32, i32
  }
}

</mosaic_0001>

<bundles_post_ra>
// kernel: multitask_forward.1
= control target key start
LH: loop header
LB: loop body
LE: loop exit
PB: predicated region body
PF: predicated region fallthrough
CT: control target
= control target key end

     0   :  { %s6121_s0 = inlined_call_operand.vmem [shape: s32[16,1], index: 0, kind: input, shape index: {}]   ;;  %s6122_s1 = inlined_call_operand.vmem [shape: f32[50,32], index: 1, kind: input, shape index: {}]   ;;  %s6123_s2 = inlined_call_operand.vmem [shape: f32[8,32], index: 2, kind: input, shape index: {}]   ;;  %s6124_s3 = inlined_call_operand.vmem [shape: f32[2,32,96], index: 3, kind: input, shape index: {}]   ;;  %s6125_s4 = inlined_call_operand.vmem [shape: f32[2,1,96], index: 4, kind: input, shape index: {}]   ;;  %s6126_s5 = inlined_call_operand.vmem [shape: f32[2,32,32], index: 5, kind: input, shape index: {}]   ;;  %s6127_s6 = inlined_call_operand.vmem [shape: f32[2,1,32], index: 6, kind: input, shape index: {}]   ;;  %s6128_s7 = inlined_call_operand.vmem [shape: f32[2,1,32], index: 7, kind: input, shape index: {}]   ;;  %s6129_s8 = inlined_call_operand.vmem [shape: f32[2,1,32], index: 8, kind: input, shape index: {}]   ;;  %s6130_s9 = inlined_call_operand.vmem [shape: f32[2,1,32], index: 9, kind: input, shape index: {}]   ;;  %s6131_s10 = inlined_call_operand.vmem [shape: f32[2,1,32], index: 10, kind: input, shape index: {}]   ;;  %s6132_s11 = inlined_call_operand.vmem [shape: f32[2,32,64], index: 11, kind: input, shape index: {}]   ;;  %s6133_s12 = inlined_call_operand.vmem [shape: f32[2,1,64], index: 12, kind: input, shape index: {}]   ;;  %s6134_s13 = inlined_call_operand.vmem [shape: f32[2,64,32], index: 13, kind: input, shape index: {}]   ;;  %s6135_s14 = inlined_call_operand.vmem [shape: f32[2,1,32], index: 14, kind: input, shape index: {}]   ;;  %s6136_s15 = inlined_call_operand.vmem [shape: f32[256,32], index: 15, kind: input, shape index: {}]   ;;  %s6137_s16 = inlined_call_operand.vmem [shape: f32[1,32], index: 16, kind: input, shape index: {}]   ;;  %s6138_s17 = inlined_call_operand.vmem [shape: f32[32,64], index: 17, kind: input, shape index: {}]   ;;  %s6139_s18 = inlined_call_operand.vmem [shape: f32[1,64], index: 18, kind: input, shape index: {}]   ;;  %s6140_s19 = inlined_call_operand.vmem [shape: f32[64,32], index: 19, kind: input, shape index: {}]   ;;  %s6141_s20 = inlined_call_operand.vmem [shape: f32[1,32], index: 20, kind: input, shape index: {}]   ;;  %s6142_s21 = inlined_call_operand.vmem [shape: f32[32,4], index: 21, kind: input, shape index: {}]   ;;  %s6143_s22 = inlined_call_operand.vmem [shape: f32[1,4], index: 22, kind: input, shape index: {}]   ;;  %s6144_s23 = inlined_call_operand.hbm [shape: f32[2,4], index: 23, kind: output, shape index: {}]  }
   0x1   :  { %6164 = sst [smem:[#allocation5_spill]] %s6121_s0 }
   0x2   :  { %6165 = sst [smem:[#allocation6_spill]] %s6122_s1 }
   0x3   :  { %6166 = sst [smem:[#allocation7_spill]] %s6123_s2 }
   0x4   :  { %6167 = sst [smem:[#allocation8_spill]] %s6124_s3 }
   0x5   :  { %6168 = sst [smem:[#allocation9_spill]] %s6125_s4 }
   0x6   :  { %6169 = sst [smem:[#allocation10_spill]] %s6126_s5 }
   0x7   :  { %6170 = sst [smem:[#allocation11_spill]] %s6127_s6 }
   0x8   :  { %6171 = sst [smem:[#allocation12_spill]] %s6128_s7 }
   0x9   :  { %6172 = sst [smem:[#allocation13_spill]] %s6139_s18 }
   0xa   :  { %s6173_s24 = sld [smem:[#allocation5_spill]]  ;;  %s6174_s18 = sld [smem:[#allocation6_spill]]  ;;  %v5174_v2 = vmov 0  }
   0xb   :  { %5054 = vset.pattern.permute.xlu0 %v5174_v2 }
  0x10   :  { %v75_v0 = vld [vmem:[%s6173_s24] sm:$0xff]  ;;  %v92_v3 = vld [vmem:[%s6174_s18 + $0x8] sm:$0xff]  ;;  %v93_v4 = vld [vmem:[%s6174_s18 + $0x10] sm:$0xff] }
  0x11   :  { %v91_v1 = vld [vmem:[%s6174_s18] sm:$0xff]  ;;  %v94_v5 = vld [vmem:[%s6174_s18 + $0x18] sm:$0xff]  ;;  %80 = vperm.xlu0 %5054, %v75_v0  }
  0x12   :  { %v4892_v6 = vpack.c.bf16 %v92_v3, %v91_v1  ;;  %v4896_v7 = vpack.c.bf16 %v94_v5, %v93_v4 }
  0x13   :  { %28 = vsyncpa [#allocation3], 0  ;;  %v76_v8 = vld [vmem:[%s6173_s24 + $0x8] sm:$0xff]  ;;  %v95_v9 = vld [vmem:[%s6174_s18 + $0x20] sm:$0xff]  ;;  %s6175_s1 = sld [smem:[#allocation8_spill]]  ;;  %vm106_vm0 = vcmask 1041408   ;;  %v77_v17 = vlaneseq }
  0x14   :  { %v96_v10 = vld [vmem:[%s6174_s18 + $0x28] sm:$0xff]  ;;  %4893 = vmatprep.subr.bf16.mxu0 %v4892_v6  ;;  %v97_v15 = vld [vmem:[%s6174_s18 + $0x30] sm:$0x3]  ;;  %v5175_v16 = vmov 0.0   ;;  %vm99_vm1 = vcmask 408576   ;;  %s6176_s0 = sld [smem:[#allocation7_spill]] }
  0x15   :  { %4895 = vmatpush3.bf16.msra.mxu0 %v4892_v6  ;;  %83 = vperm.xlu0 %5054, %v76_v8   ;;  %v4900_v11 = vpack.c.bf16 %v96_v10, %v95_v9  ;;  %v78_v18 = vand.u32 127, %v77_v17  ;;  %vm196_vm4 = vcmask 261120   ;;  %s6177_s25 = sld [smem:[#allocation9_spill]]  ;;  %vm5176_vm5 = vmmov 0   ;;  %s6162_s5 = smov 112  }
  0x16   :  { %4897 = vmatprep.subr.bf16.mxu0 %v4896_v7  ;;  %s5178_s26 = smov 120   ;;  %s5179_s2 = smov 104   ;;  %vm294_vm6 = vcmask 64512   ;;  %vm1623_vm7 = vcmask 130048   ;;  %vm1626_vm8 = vcmask 195584   ;;  %vm1877_vm9 = vcmask 523264  }
  0x17   :  { %s6160_s24 = smov 96   ;;  %s6158_s6 = smov 64   ;;  %vm3834_vm10 = vcmask 1041409   ;;  %vm3878_vm11 = vcmask 785408   ;;  %vm4251_vm12 = vcmask 25600  }
  0x18   :  { %s6178_s7 = sld [smem:[#allocation10_spill]]  ;;  %s6156_s18 = smov 8  }
  0x19   :  { %v185_v12 = vld [vmem:[%s6175_s1] sm:$0xff]  ;;  %v186_v13 = vld [vmem:[%s6175_s1 + $0x8] sm:$0xff]  ;;  %4899 = vmatpush3.bf16.msra.mxu0 %v4896_v7  ;;  %v187_v23 = vld [vmem:[%s6175_s1 + $0x10] sm:$0xff]  ;;  %s6154_s27 = smov 16   ;;  %s6152_s28 = smov 24  }
  0x1a   :  { %v4904_v14 = vpack.c.bf16 %v186_v13, %v185_v12  ;;  %4901 = vmatprep.subr.bf16.mxu0 %v4900_v11  ;;  %v188_v24 = vld [vmem:[%s6175_s1 + $0x18] sm:$0xff]  ;;  %v98_v26 = vld [vmem:[%s6176_s0] sm:$0xff]  ;;  %s6179_s0 = sld [smem:[#allocation11_spill]]  ;;  %s6180_s29 = sld [smem:[#allocation12_spill]] }
  0x1b   :  { %v4908_v25 = vpack.c.bf16 %v188_v24, %v187_v23  ;;  %v4272_v31 = vld [vmem:[%s6177_s25] ss:$0 sm:$0xff]  ;;  %s6181_s4 = smov 112   ;;  %s6182_s30 = smov 96  }
  0x1c   :  { %4905 = vmatprep.subr.bf16.mxu1 %v4904_v14 }
  0x1d   :  { %4907 = vmatpush3.bf16.msra.mxu1 %v4904_v14  ;;  %4903 = vmatpush3.bf16.msra.mxu0 %v4900_v11 }
  0x1e   :  { %4582 = vmatprep.subr.msk.mxu0 %vm106_vm0, %v97_v15  ;;  %4909 = vmatprep.subr.bf16.mxu1 %v4908_v25 }
  0x21   :  { %4583 = vmatpush3.msk.msra.mxu0 %vm106_vm0, %v97_v15  ;;  %4911 = vmatpush3.bf16.msra.mxu1 %v4908_v25 }
  0x22   :  { %4608 = vmatprep.subr.mxu0 %v5175_v16  ;;  %4598 = vmatprep.subr.mxu1 %v5175_v16 }
  0x90   :  { %v81_v19 = vpop.permute.xlu0 %80 }
  0x91   :  { %vm85_vm2 = vcmp.eq.s32.totalorder %v81_v19, %v78_v18 }
  0x92   :  { %v4267_v20 = vsel %vm85_vm2, 1.0, %v5175_v16 }
  0x93   :  { %4584 = vmatprep.mubr.msk.f32.mxu0 %vm99_vm1, %v4267_v20 }
  0x94   :  { %v84_v21 = vpop.permute.xlu0 %83 }
  0x95   :  { %vm86_vm3 = vcmp.eq.s32.totalorder %v84_v21, %v78_v18 }
  0x96   :  { %v4268_v22 = vsel %vm86_vm3, 1.0, %v5175_v16 }
  0x97   :  { %4585 = vmatmul.mubr.msk.f32.vlgmr.msra.gmra.mrb[0].mxu0 %vm99_vm1, %v4268_v22 }
  0x98   :  { %4610 = vmatprep.mubr.msk.f32.mxu0 %vm5176_vm5, %v5175_v16 }
 0x16a   :  { %v4586_v27 = vpop.f32.mrb[0].mxu0 }
 0x16b   :  { %v176_v28 = vpop.f32.mrb[1].mxu0  ;;  %v5356_v30 = vadd.f32 %v4586_v27, %v98_v26 }
 0x16c   :  { %v5354_v29 = vadd.f32 %v176_v28, %v98_v26 }
 0x16e   :  { %4595 = vmatprep.mubr.msk.f32.mxu1 %vm196_vm4, %v5354_v29 }
 0x16f   :  { %4596 = vmatmul.mubr.msk.f32.vlgmr.msra.gmra.mrb[0].mxu1 %vm196_vm4, %v5356_v30 }
 0x170   :  { %4600 = vmatprep.mubr.msk.f32.mxu1 %vm5176_vm5, %v5175_v16 }
 0x242   :  { %v4597_v32 = vpop.f32.mrb[0].mxu1 }
 0x243   :  { %v269_v33 = vpop.f32.mrb[1].mxu1  ;;  %v5375_v35 = vadd.f32 %v4597_v32, %v4272_v31 }
 0x244   :  { %v5369_v34 = vadd.f32 %v4272_v31, %v269_v33 }
 0x246   :  { %284 = vrot.lane.b32.xlu0 %v5369_v34, %s6162_s5  ;;  %280 = vrot.lane.b32.xlu1 %v5369_v34, %s5178_s26 }
 0x24a   :  { %288 = vrot.lane.b32.xlu0 %v5369_v34, %s5179_s2  ;;  %282 = vrot.lane.b32.xlu1 %v5375_v35, %s5178_s26 }
 0x24e   :  { %292 = vrot.lane.b32.xlu0 %v5369_v34, %s6160_s24  ;;  %286 = vrot.lane.b32.xlu1 %v5375_v35, %s6162_s5 }
 0x252   :  { %290 = vrot.lane.b32.xlu1 %v5375_v35, %s5179_s2 }
 0x256   :  { %369 = vrot.lane.b32.xlu1 %v5375_v35, %s6160_s24 }
 0x2b8   :  { %v5389_v36 = vpop.permute.xlu0 %284  ;;  %v5391_v37 = vpop.permute.xlu1 %280 }
 0x2b9   :  { %445 = vrot.lane.b32.xlu0 %v5391_v37, %s6160_s24 }
 0x2bc   :  { %v5395_v38 = vpop.permute.xlu0 %288  ;;  %v5397_v39 = vpop.permute.xlu1 %282 }
 0x2bd   :  { %597 = vrot.lane.b32.xlu0 %v5389_v36, %s6160_s24  ;;  %521 = vrot.lane.b32.xlu1 %v5397_v39, %s6160_s24 }
 0x2c0   :  { %v293_v40 = vpop.permute.xlu0 %292  ;;  %v5403_v41 = vpop.permute.xlu1 %286 }
 0x2c1   :  { %4599 = vmatpush3.xpose.msk.msra.mxu1 %vm294_vm6, %v293_v40  ;;  %749 = vrot.lane.b32.xlu0 %v5395_v38, %s6160_s24 }
 0x2c2   :  { %673 = vrot.lane.b32.xlu1 %v5403_v41, %s6160_s24  ;;  %4603 = vmatprep.subr.mxu1 %v5175_v16 }
 0x2c4   :  { %4601 = vmatmul.mubr.msk.f32.vlgmr.msra.gmra.mrb[2].mxu1 %vm294_vm6, %v5369_v34  ;;  %v5413_v42 = vpop.permute.xlu1 %290 }
 0x2c5   :  { %4605 = vmatprep.mubr.msk.f32.mxu1 %vm5176_vm5, %v5175_v16 }
 0x2c6   :  { %825 = vrot.lane.b32.xlu1 %v5413_v42, %s6160_s24 }
 0x2c8   :  { %v370_v43 = vpop.permute.xlu1 %369 }
 0x2c9   :  { %4604 = vmatpush3.xpose.msk.msra.mxu1 %vm294_vm6, %v370_v43 }
 0x2ca   :  { %4613 = vmatprep.subr.mxu1 %v5175_v16 }
 0x2cc   :  { %4606 = vmatmul.mubr.msk.f32.vlgmr.msra.gmra.mrb[4].mxu1 %vm294_vm6, %v5375_v35 }
 0x2cd   :  { %4615 = vmatprep.mubr.msk.f32.mxu1 %vm5176_vm5, %v5175_v16 }
 0x32b   :  { %v446_v44 = vpop.permute.xlu0 %445 }
 0x32c   :  { %4609 = vmatpush3.xpose.msk.msra.mxu0 %vm294_vm6, %v446_v44 }
 0x32d   :  { %4618 = vmatprep.subr.mxu0 %v5175_v16 }
 0x32f   :  { %4611 = vmatmul.mubr.msk.f32.vlgmr.msra.gmra.mrb[2].mxu0 %vm294_vm6, %v5391_v37  ;;  %v598_v45 = vpop.permute.xlu0 %597  ;;  %v522_v46 = vpop.permute.xlu1 %521 }
 0x330   :  { %4614 = vmatpush3.xpose.msk.msra.mxu1 %vm294_vm6, %v522_v46  ;;  %4619 = vmatpush3.xpose.msk.msra.mxu0 %vm294_vm6, %v598_v45 }
 0x331   :  { %4620 = vmatprep.mubr.msk.f32.mxu0 %vm5176_vm5, %v5175_v16  ;;  %4628 = vmatprep.subr.mxu0 %v5175_v16 }
 0x332   :  { %4623 = vmatprep.subr.mxu1 %v5175_v16 }
 0x333   :  { %4621 = vmatmul.mubr.msk.f32.vlgmr.msra.gmra.mrb[4].mxu0 %vm294_vm6, %v5389_v36  ;;  %v750_v47 = vpop.permute.xlu0 %749  ;;  %4616 = vmatmul.mubr.msk.f32.vlgmr.msra.gmra.mrb[6].mxu1 %vm294_vm6, %v5397_v39 }
 0x334   :  { %v674_v48 = vpop.permute.xlu1 %673  ;;  %4629 = vmatpush3.xpose.msk.msra.mxu0 %vm294_vm6, %v750_v47  ;;  %4625 = vmatprep.mubr.msk.f32.mxu1 %vm5176_vm5, %v5175_v16 }
 0x335   :  { %4624 = vmatpush3.xpose.msk.msra.mxu1 %vm294_vm6, %v674_v48  ;;  %4630 = vmatprep.mubr.msk.f32.mxu0 %vm5176_vm5, %v5175_v16 }
 0x336   :  { %4633 = vmatprep.subr.mxu1 %v5175_v16  ;;  %4638 = vmatprep.subr.mxu0 %v5175_v16 }
 0x337   :  { %4631 = vmatmul.mubr.msk.f32.vlgmr.msra.gmra.mrb[6].mxu0 %vm294_vm6, %v5395_v38 }
 0x338   :  { %4626 = vmatmul.mubr.msk.f32.vlgmr.msra.gmra.mrb[8].mxu1 %vm294_vm6, %v5403_v41  ;;  %v826_v49 = vpop.permute.xlu1 %825  ;;  %4640 = vmatprep.mubr.msk.f32.mxu0 %vm5176_vm5, %v5175_v16 }
 0x339   :  { %4634 = vmatpush3.xpose.msk.msra.mxu1 %vm294_vm6, %v826_v49  ;;  %4635 = vmatprep.mubr.msk.f32.mxu1 %vm5176_vm5, %v5175_v16 }
 0x33a   :  { %4643 = vmatprep.subr.mxu1 %v5175_v16 }
 0x33c   :  { %4636 = vmatmul.mubr.msk.f32.vlgmr.msra.gmra.mrb[10].mxu1 %vm294_vm6, %v5413_v42 }
 0x33d   :  { %4645 = vmatprep.mubr.msk.f32.mxu1 %vm5176_vm5, %v5175_v16 }
 0x397   :  { %v365_v50 = vpop.f32.mrb[2].mxu1 }
 0x398   :  { %v4602_v51 = vpop.f32.mrb[3].mxu1  ;;  %v901_v52 = vsel %vm294_vm6, %v365_v50, -inf }
 0x399   :  { %902 = vmax.xlane.f32.xlu0 %v901_v52 }
 0x39f   :  { %v441_v53 = vpop.f32.mrb[4].mxu1 }
 0x3a0   :  { %v4607_v54 = vpop.f32.mrb[5].mxu1  ;;  %v904_v55 = vsel %vm294_vm6, %v441_v53, -inf }
 0x3a1   :  { %905 = vmax.xlane.f32.xlu1 %v904_v55 }
 0x402   :  { %v517_v56 = vpop.f32.mrb[2].mxu0 }
 0x403   :  { %v4612_v57 = vpop.f32.mrb[3].mxu0  ;;  %v907_v58 = vsel %vm294_vm6, %v517_v56, -inf }
 0x404   :  { %908 = vmax.xlane.f32.xlu0 %v907_v58 }
 0x406   :  { %v593_v59 = vpop.f32.mrb[6].mxu1  ;;  %v669_v60 = vpop.f32.mrb[4].mxu0 }
 0x407   :  { %v4617_v61 = vpop.f32.mrb[7].mxu1  ;;  %v4622_v62 = vpop.f32.mrb[5].mxu0  ;;  %v913_v63 = vsel %vm294_vm6, %v669_v60, -inf  ;;  %v910_v0 = vsel %vm294_vm6, %v593_v59, -inf }
 0x408   :  { %914 = vmax.xlane.f32.xlu1 %v913_v63  ;;  %911 = vmax.xlane.f32.xlu0 %v910_v0 }
 0x40a   :  { %v821_v1 = vpop.f32.mrb[6].mxu0 }
 0x40b   :  { %v745_v2 = vpop.f32.mrb[8].mxu1  ;;  %v4632_v3 = vpop.f32.mrb[7].mxu0  ;;  %v919_v4 = vsel %vm294_vm6, %v821_v1, -inf }
 0x40c   :  { %v4627_v5 = vpop.f32.mrb[9].mxu1  ;;  %920 = vmax.xlane.f32.xlu1 %v919_v4  ;;  %v916_v6 = vsel %vm294_vm6, %v745_v2, -inf }
 0x40d   :  { %917 = vmax.xlane.f32.xlu0 %v916_v6 }
 0x40f   :  { %v897_v7 = vpop.f32.mrb[10].mxu1 }
 0x410   :  { %v4637_v8 = vpop.f32.mrb[11].mxu1  ;;  %v922_v9 = vsel %vm294_vm6, %v897_v7, -inf }
 0x411   :  { %923 = vmax.xlane.f32.xlu0 %v922_v9 }
 0x41d   :  { %989 = vrot.lane.b32.xlu1 %v5369_v34, %s6158_s6 }
 0x421   :  { %1141 = vrot.lane.b32.xlu1 %v5391_v37, %s6158_s6 }
 0x425   :  { %1217 = vrot.lane.b32.xlu1 %v5397_v39, %s6158_s6 }
 0x426   :  { %v903_v11 = vpop.xlane.xlu0 %902 }
 0x427   :  { %1065 = vrot.lane.b32.xlu0 %v5375_v35, %s6158_s6  ;;  %v925_v13 = vsub.f32 %v365_v50, %v903_v11 }
 0x429   :  { %1369 = vrot.lane.b32.xlu1 %v5403_v41, %s6158_s6  ;;  %v933_v15 = vmul.f32 1.442695, %v925_v13 }
 0x42b   :  { %1293 = vrot.lane.b32.xlu0 %v5389_v36, %s6158_s6 }
 0x42e   :  { %v906_v10 = vpop.xlane.xlu1 %905 }
 0x42f   :  { %v926_v12 = vsub.f32 %v441_v53, %v906_v10 }
 0x431   :  { %v935_v14 = vmul.f32 1.442695, %v926_v12 }
 0x433   :  { %5070 = vpow2.f32 %v935_v14 }
 0x434   :  { %5072 = vpow2.f32 %v933_v15 }
 0x43d   :  { %v5481_v17 = vpop.eup %5070 }
 0x43e   :  { %v5483_v18 = vpop.eup %5072  ;;  %v952_v19 = vsel %vm294_vm6, %v5481_v17, 0.0 }
 0x43f   :  { %v949_v20 = vsel %vm294_vm6, %v5483_v18, 0.0 }
 0x44a   :  { %953 = vadd.xlane.f32.xlu0 %v952_v19 }
 0x44d   :  { %950 = vadd.xlane.f32.xlu1 %v949_v20 }
 0x491   :  { %v909_v21 = vpop.xlane.xlu0 %908 }
 0x492   :  { %v927_v22 = vsub.f32 %v517_v56, %v909_v21 }
 0x494   :  { %v937_v23 = vmul.f32 1.442695, %v927_v22 }
 0x495   :  { %v912_v24 = vpop.xlane.xlu0 %911  ;;  %v915_v25 = vpop.xlane.xlu1 %914 }
 0x496   :  { %5074 = vpow2.f32 %v937_v23  ;;  %v928_v26 = vsub.f32 %v593_v59, %v912_v24  ;;  %v929_v27 = vsub.f32 %v669_v60, %v915_v25 }
 0x498   :  { %v939_v28 = vmul.f32 1.442695, %v928_v26  ;;  %v941_v31 = vmul.f32 1.442695, %v929_v27  ;;  %v1629_v26 = vld [vmem:[%s6178_s7] sm:$0xff]  ;;  %v1630_v27 = vld [vmem:[%s6178_s7 + $0x8] sm:$0xff] }
 0x499   :  { %v921_v32 = vpop.xlane.xlu1 %920 }
 0x49a   :  { %5076 = vpow2.f32 %v939_v28  ;;  %v918_v33 = vpop.xlane.xlu0 %917  ;;  %v931_v34 = vsub.f32 %v821_v1, %v921_v32  ;;  %v4912_v28 = vpack.c.bf16 %v1630_v27, %v1629_v26  ;;  %v1632_v32 = vld [vmem:[%s6178_s7 + $0x18] sm:$0xff] }
 0x49b   :  { %5078 = vpow2.f32 %v941_v31  ;;  %v930_v35 = vsub.f32 %v745_v2, %v918_v33  ;;  %v1631_v31 = vld [vmem:[%s6178_s7 + $0x10] sm:$0xff] }
 0x49c   :  { %v945_v36 = vmul.f32 1.442695, %v931_v34  ;;  %v4916_v33 = vpack.c.bf16 %v1632_v32, %v1631_v31 }
 0x49d   :  { %v943_v37 = vmul.f32 1.442695, %v930_v35  ;;  %v990_v39 = vpop.permute.xlu1 %989 }
 0x49e   :  { %5080 = vpow2.f32 %v945_v36  ;;  %v924_v40 = vpop.xlane.xlu0 %923  ;;  %4639 = vmatpush3.msra.mxu0 %v990_v39 }
 0x49f   :  { %5082 = vpow2.f32 %v943_v37  ;;  %v932_v41 = vsub.f32 %v897_v7, %v924_v40  ;;  %4648 = vmatprep.subr.mxu0 %v5175_v16 }
 0x4a0   :  { %v5075_v43 = vpop.eup %5074 }
 0x4a1   :  { %v947_v44 = vmul.f32 1.442695, %v932_v41  ;;  %v955_v45 = vsel %vm294_vm6, %v5075_v43, 0.0  ;;  %v1142_v57 = vpop.permute.xlu1 %1141 }
 0x4a2   :  { %v1066_v46 = vpop.permute.xlu0 %1065  ;;  %956 = vadd.xlane.f32.xlu1 %v955_v45 }
 0x4a3   :  { %5084 = vpow2.f32 %v947_v44  ;;  %4644 = vmatpush3.msra.mxu1 %v1066_v46 }
 0x4a4   :  { %v5077_v47 = vpop.eup %5076  ;;  %4653 = vmatprep.subr.mxu1 %v5175_v16 }
 0x4a5   :  { %v5079_v48 = vpop.eup %5078  ;;  %v958_v49 = vsel %vm294_vm6, %v5077_v47, 0.0  ;;  %v1218_v58 = vpop.permute.xlu1 %1217 }
 0x4a6   :  { %959 = vadd.xlane.f32.xlu0 %v958_v49  ;;  %v961_v50 = vsel %vm294_vm6, %v5079_v48, 0.0  ;;  %v1294_v59 = vpop.permute.xlu0 %1293 }
 0x4a7   :  { %962 = vadd.xlane.f32.xlu1 %v961_v50 }
 0x4a8   :  { %v5494_v51 = vpop.eup %5080 }
 0x4a9   :  { %v5083_v52 = vpop.eup %5082  ;;  %v967_v53 = vsel %vm294_vm6, %v5494_v51, 0.0  ;;  %v1370_v60 = vpop.permute.xlu1 %1369 }
 0x4aa   :  { %v964_v54 = vsel %vm294_vm6, %v5083_v52, 0.0 }
 0x4ab   :  { %965 = vadd.xlane.f32.xlu0 %v964_v54  ;;  %968 = vadd.xlane.f32.xlu1 %v967_v53 }
 0x4ad   :  { %v5499_v55 = vpop.eup %5084 }
 0x4ae   :  { %v970_v56 = vsel %vm294_vm6, %v5499_v55, 0.0 }
 0x4af   :  { %971 = vadd.xlane.f32.xlu0 %v970_v56 }
 0x4bc   :  { %1521 = vrot.lane.b32.xlu1 %v5413_v42, %s6158_s6 }
 0x4c5   :  { %1445 = vrot.lane.b32.xlu0 %v5395_v38, %s6158_s6  ;;  %s6184_s6 = smov 8  }
 0x4d7   :  { %v954_v61 = vpop.xlane.xlu0 %953 }
 0x4d8   :  { %5086 = vrcp.f32 %v954_v61 }
 0x4da   :  { %v951_v62 = vpop.xlane.xlu1 %950 }
 0x4db   :  { %5088 = vrcp.f32 %v951_v62 }
 0x4e2   :  { %v5087_v63 = vpop.eup %5086 }
 0x4e3   :  { %v982_v0 = vmul.f32 %v5087_v63, %v5481_v17 }
 0x4e5   :  { %v5089_v1 = vpop.eup %5088  ;;  %4646 = vmatmul.mubr.msk.f32.vlgmr.msra.gmra.mrb[12].mxu1 %vm294_vm6, %v982_v0 }
 0x4e6   :  { %v981_v2 = vmul.f32 %v5089_v1, %v5483_v18  ;;  %4654 = vmatpush3.msra.mxu1 %v1218_v58  ;;  %4655 = vmatprep.mubr.msk.f32.mxu1 %vm5176_vm5, %v5175_v16 }
 0x4e7   :  { %4663 = vmatprep.subr.mxu1 %v5175_v16 }
 0x4e8   :  { %4641 = vmatmul.mubr.msk.f32.vlgmr.msra.gmra.mrb[8].mxu0 %vm294_vm6, %v981_v2 }
 0x4e9   :  { %4649 = vmatpush3.msra.mxu0 %v1142_v57  ;;  %4650 = vmatprep.mubr.msk.f32.mxu0 %vm5176_vm5, %v5175_v16 }
 0x4ea   :  { %4658 = vmatprep.subr.mxu0 %v5175_v16 }
 0x52f   :  { %v957_v38 = vpop.xlane.xlu1 %956 }
 0x530   :  { %5090 = vrcp.f32 %v957_v38 }
 0x533   :  { %v960_v42 = vpop.xlane.xlu0 %959 }
 0x534   :  { %5092 = vrcp.f32 %v960_v42  ;;  %v963_v3 = vpop.xlane.xlu1 %962 }
 0x535   :  { %5094 = vrcp.f32 %v963_v3 }
 0x538   :  { %v966_v4 = vpop.xlane.xlu0 %965  ;;  %v969_v5 = vpop.xlane.xlu1 %968 }
 0x539   :  { %5096 = vrcp.f32 %v966_v4 }
 0x53a   :  { %v5091_v6 = vpop.eup %5090  ;;  %5098 = vrcp.f32 %v969_v5 }
 0x53b   :  { %v983_v7 = vmul.f32 %v5091_v6, %v5075_v43 }
 0x53c   :  { %v972_v8 = vpop.xlane.xlu0 %971  ;;  %v1522_v19 = vpop.permute.xlu1 %1521 }
 0x53d   :  { %5100 = vrcp.f32 %v972_v8  ;;  %4651 = vmatmul.mubr.msk.f32.vlgmr.msra.gmra.mrb[10].mxu0 %vm294_vm6, %v983_v7 }
 0x53e   :  { %v5093_v9 = vpop.eup %5092  ;;  %4659 = vmatpush3.msra.mxu0 %v1294_v59  ;;  %4660 = vmatprep.mubr.msk.f32.mxu0 %vm5176_vm5, %v5175_v16 }
 0x53f   :  { %v5095_v10 = vpop.eup %5094  ;;  %v984_v11 = vmul.f32 %v5093_v9, %v5077_v47  ;;  %4668 = vmatprep.subr.mxu0 %v5175_v16 }
 0x540   :  { %v985_v12 = vmul.f32 %v5095_v10, %v5079_v48  ;;  %v1446_v13 = vpop.permute.xlu0 %1445 }
 0x541   :  { %4656 = vmatmul.mubr.msk.f32.vlgmr.msra.gmra.mrb[14].mxu1 %vm294_vm6, %v984_v11 }
 0x542   :  { %4661 = vmatmul.mubr.msk.f32.vlgmr.msra.gmra.mrb[12].mxu0 %vm294_vm6, %v985_v12  ;;  %4664 = vmatpush3.msra.mxu1 %v1370_v60  ;;  %v4299_v60 = vld [vmem:[%s6179_s0] ss:$0 sm:$0xff]  ;;  %v1769_v12 = vld [vmem:[%s6132_s11 + $0x8] sm:$0xff] }
 0x543   :  { %v5097_v14 = vpop.eup %5096  ;;  %4669 = vmatpush3.msra.mxu0 %v1446_v13  ;;  %4665 = vmatprep.mubr.msk.f32.mxu1 %vm5176_vm5, %v5175_v16 }
 0x544   :  { %v5099_v15 = vpop.eup %5098  ;;  %v986_v17 = vmul.f32 %v5097_v14, %v5083_v52  ;;  %4670 = vmatprep.mubr.msk.f32.mxu0 %vm5176_vm5, %v5175_v16  ;;  %4673 = vmatprep.subr.mxu1 %v5175_v16  ;;  %v1770_v14 = vld [vmem:[%s6132_s11 + $0x10] sm:$0xff] }
 0x545   :  { %v987_v18 = vmul.f32 %v5099_v15, %v5494_v51  ;;  %4913 = vmatprep.subr.bf16.mxu0 %v4912_v28  ;;  %v1771_v15 = vld [vmem:[%s6132_s11 + $0x18] sm:$0xff] }
 0x546   :  { %4666 = vmatmul.mubr.msk.f32.vlgmr.msra.gmra.mrb[16].mxu1 %vm294_vm6, %v986_v17  ;;  %v4924_v17 = vpack.c.bf16 %v1771_v15, %v1770_v14 }
 0x547   :  { %v5101_v20 = vpop.eup %5100  ;;  %4671 = vmatmul.mubr.msk.f32.vlgmr.msra.gmra.mrb[14].mxu0 %vm294_vm6, %v987_v18  ;;  %4674 = vmatpush3.msra.mxu1 %v1522_v19  ;;  %v1862_v18 = vld [vmem:[%s6134_s13] sm:$0xff]  ;;  %v1863_v19 = vld [vmem:[%s6134_s13 + $0x8] sm:$0xff] }
 0x548   :  { %v988_v21 = vmul.f32 %v5101_v20, %v5499_v55  ;;  %4675 = vmatprep.mubr.msk.f32.mxu1 %vm5176_vm5, %v5175_v16  ;;  %4915 = vmatpush3.bf16.msra.mxu0 %v4912_v28  ;;  %v1864_v20 = vld [vmem:[%s6134_s13 + $0x10] sm:$0xff] }
 0x549   :  { %4917 = vmatprep.subr.bf16.mxu0 %v4916_v33 }
 0x54a   :  { %4676 = vmatmul.mubr.msk.f32.vlgmr.msra.gmra.mrb[18].mxu1 %vm294_vm6, %v988_v21  ;;  %v4928_v21 = vpack.c.bf16 %v1863_v19, %v1862_v18 }
 0x54c   :  { %4919 = vmatpush3.bf16.msra.mxu0 %v4916_v33 }
 0x54d   :  { %4929 = vmatprep.subr.bf16.mxu0 %v4928_v21 }
 0x5b8   :  { %v1137_v22 = vpop.f32.mrb[12].mxu1 }
 0x5b9   :  { %v4647_v23 = vpop.f32.mrb[13].mxu1 }
 0x5bb   :  { %v1061_v24 = vpop.f32.mrb[8].mxu0 }
 0x5bc   :  { %v4642_v25 = vpop.f32.mrb[9].mxu0 }
 0x5bd   :  { %v1867_v25 = vld [vmem:[%s6134_s13 + $0x28] sm:$0xff] }
 0x610   :  { %v1213_v34 = vpop.f32.mrb[10].mxu0 }
 0x611   :  { %1599 = vrot.lane.b32.xlu0 %v1213_v34, %s6156_s18  ;;  %v4652_v35 = vpop.f32.mrb[11].mxu0 }
 0x614   :  { %v1289_v36 = vpop.f32.mrb[14].mxu1 }
 0x615   :  { %v1365_v37 = vpop.f32.mrb[12].mxu0  ;;  %1601 = vrot.lane.b32.xlu1 %v1289_v36, %s6156_s18  ;;  %v4657_v39 = vpop.f32.mrb[15].mxu1  ;;  %v4302_v36 = vld [vmem:[%s6180_s29] ss:$0 sm:$0xff]  ;;  %s6185_s18 = smov 16  }
 0x616   :  { %1607 = vrot.lane.b32.xlu0 %v1365_v37, %s6154_s27  ;;  %v4662_v40 = vpop.f32.mrb[13].mxu0  ;;  %v4303_v39 = vld [vmem:[%s6129_s8] ss:$0 sm:$0xff] }
 0x619   :  { %v1441_v41 = vpop.f32.mrb[16].mxu1 }
 0x61a   :  { %v1517_v43 = vpop.f32.mrb[14].mxu0  ;;  %1609 = vrot.lane.b32.xlu1 %v1441_v41, %s6154_s27  ;;  %v4667_v44 = vpop.f32.mrb[17].mxu1 }
 0x61b   :  { %1615 = vrot.lane.b32.xlu0 %v1517_v43, %s6152_s28  ;;  %v4672_v45 = vpop.f32.mrb[15].mxu0 }
 0x61d   :  { %v1593_v46 = vpop.f32.mrb[18].mxu1 }
 0x61e   :  { %1617 = vrot.lane.b32.xlu1 %v1593_v46, %s6152_s28  ;;  %v4677_v47 = vpop.f32.mrb[19].mxu1 }
 0x61f   :  { %v1868_v47 = vld [vmem:[%s6134_s13 + $0x30] sm:$0xff] }
 0x683   :  { %v1600_v48 = vpop.permute.xlu0 %1599 }
 0x684   :  { %v1621_v51 = vsel %vm294_vm6, %v1061_v24, %v1600_v48  ;;  %v1866_v24 = vld [vmem:[%s6134_s13 + $0x20] sm:$0xff]  ;;  %v1869_v48 = vld [vmem:[%s6134_s13 + $0x38] sm:$0xff] }
 0x685   :  { %v4936_v26 = vpack.c.bf16 %v1867_v25, %v1866_v24 }
 0x687   :  { %v1602_v49 = vpop.permute.xlu1 %1601 }
 0x688   :  { %v1608_v50 = vpop.permute.xlu0 %1607  ;;  %v1622_v56 = vsel %vm294_vm6, %v1137_v22, %v1602_v49  ;;  %v1865_v22 = vld [vmem:[%s6134_s13 + $0x18] sm:$0xff]  ;;  %v4940_v49 = vpack.c.bf16 %v1869_v48, %v1868_v47 }
 0x689   :  { %v1624_v53 = vsel %vm1623_vm7, %v1621_v51, %v1608_v50  ;;  %v4932_v23 = vpack.c.bf16 %v1865_v22, %v1864_v20  ;;  %v4304_v50 = vld [vmem:[%s6133_s12] ss:$0 sm:$0xff] }
 0x68a   :  { %v4310_v22 = vld [vmem:[%s6130_s9] ss:$0 sm:$0xff] }
 0x68c   :  { %v1610_v52 = vpop.permute.xlu1 %1609 }
 0x68d   :  { %v1616_v54 = vpop.permute.xlu0 %1615  ;;  %v1625_v57 = vsel %vm1623_vm7, %v1622_v56, %v1610_v52 }
 0x68e   :  { %v1627_v55 = vsel %vm1626_vm8, %v1624_v53, %v1616_v54 }
 0x68f   :  { %4686 = vmatprep.mubr.msk.f32.mxu0 %vm196_vm4, %v1627_v55 }
 0x690   :  { %v1618_v58 = vpop.permute.xlu1 %1617 }
 0x691   :  { %v1628_v59 = vsel %vm1626_vm8, %v1625_v57, %v1618_v58  ;;  %v4307_v57 = vld [vmem:[%s6135_s14] ss:$0 sm:$0xff] }
 0x692   :  { %4687 = vmatmul.mubr.msk.f32.vlgmr.msra.gmra.mrb[16].mxu0 %vm196_vm4, %v1628_v59 }
 0x693   :  { %4931 = vmatpush3.bf16.msra.mxu0 %v4928_v21 }
 0x694   :  { %4933 = vmatprep.subr.bf16.mxu0 %v4932_v23 }
 0x697   :  { %4935 = vmatpush3.bf16.msra.mxu0 %v4932_v23 }
 0x698   :  { %4937 = vmatprep.subr.bf16.mxu0 %v4936_v26 }
 0x69b   :  { %4939 = vmatpush3.bf16.msra.mxu0 %v4936_v26  ;;  %v4311_v26 = vld [vmem:[%s6131_s10] ss:$0 sm:$0xff] }
 0x69c   :  { %4941 = vmatprep.subr.bf16.mxu0 %v4940_v49 }
 0x69f   :  { %4943 = vmatpush3.bf16.msra.mxu0 %v4940_v49 }
 0x6a0   :  { %4740 = vmatprep.subr.mxu0 %v5175_v16 }
 0x765   :  { %v4688_v61 = vpop.f32.mrb[16].mxu0 }
 0x766   :  { %v1718_v62 = vadd.f32 %v4688_v61, %v4299_v60  ;;  %v1712_v63 = vpop.f32.mrb[17].mxu0 }
 0x767   :  { %v1713_v0 = vadd.f32 %v4299_v60, %v1712_v63 }
 0x768   :  { %v1722_v1 = vadd.f32 %v1718_v62, %v5356_v30 }
 0x769   :  { %v1721_v2 = vadd.f32 %v1713_v0, %v5354_v29  ;;  %v1768_v29 = vld [vmem:[%s6132_s11] sm:$0xff] }
 0x76a   :  { %v1728_v38 = vsel %vm196_vm4, %v1722_v1, 0.0  ;;  %v4920_v13 = vpack.c.bf16 %v1769_v12, %v1768_v29  ;;  %v4314_v29 = vld [vmem:[%s6175_s1 + $0x30] sm:$0xff]  ;;  %v4315_v12 = vld [vmem:[%s6175_s1 + $0x38] sm:$0xff] }
 0x76b   :  { %1729 = vadd.xlane.f32.xlu1 %v1728_v38  ;;  %v1725_v42 = vsel %vm196_vm4, %v1721_v2, 0.0 }
 0x76c   :  { %1726 = vadd.xlane.f32.xlu0 %v1725_v42  ;;  %4921 = vmatprep.subr.bf16.mxu1 %v4920_v13 }
 0x76d   :  { %4923 = vmatpush3.bf16.msra.mxu1 %v4920_v13  ;;  %v4948_v13 = vpack.c.bf16 %v4315_v12, %v4314_v29 }
 0x76e   :  { %4925 = vmatprep.subr.bf16.mxu1 %v4924_v17 }
 0x771   :  { %4927 = vmatpush3.bf16.msra.mxu1 %v4924_v17 }
 0x7f8   :  { %v1730_v3 = vpop.xlane.xlu1 %1729 }
 0x7f9   :  { %v1733_v4 = vmul.f32 0.03125, %v1730_v3  ;;  %v1727_v5 = vpop.xlane.xlu0 %1726 }
 0x7fa   :  { %v1732_v6 = vmul.f32 0.03125, %v1727_v5 }
 0x7fb   :  { %v1735_v7 = vsub.f32 %v1722_v1, %v1733_v4 }
 0x7fc   :  { %v1734_v8 = vsub.f32 %v1721_v2, %v1732_v6 }
 0x7fd   :  { %v1737_v11 = vmul.f32 %v1735_v7, %v1735_v7 }
 0x7fe   :  { %v1736_v9 = vmul.f32 %v1734_v8, %v1734_v8 }
 0x7ff   :  { %v1741_v30 = vsel %vm196_vm4, %v1737_v11, 0.0  ;;  %v4313_v11 = vld [vmem:[%s6175_s1 + $0x28] sm:$0xff] }
 0x800   :  { %v1738_v10 = vsel %vm196_vm4, %v1736_v9, 0.0 }
 0x801   :  { %1739 = vadd.xlane.f32.xlu0 %v1738_v10  ;;  %v4312_v10 = vld [vmem:[%s6175_s1 + $0x20] sm:$0xff] }
 0x805   :  { %1742 = vadd.xlane.f32.xlu0 %v1741_v30  ;;  %v4944_v30 = vpack.c.bf16 %v4313_v11, %v4312_v10 }
 0x807   :  { %4945 = vmatprep.subr.bf16.mxu1 %v4944_v30 }
 0x88e   :  { %v1740_v27 = vpop.xlane.xlu0 %1739 }
 0x88f   :  { %v1744_v28 = vmul.f32 0.03125, %v1740_v27 }
 0x891   :  { %v1746_v31 = vadd.f32 1e-05, %v1744_v28 }
 0x892   :  { %v1743_v32 = vpop.xlane.xlu0 %1742 }
 0x893   :  { %5102 = vrsqrt.f32 %v1746_v31  ;;  %v1745_v33 = vmul.f32 0.03125, %v1743_v32 }
 0x895   :  { %v1747_v34 = vadd.f32 1e-05, %v1745_v33  ;;  %v4317_v33 = vld [vmem:[%s6177_s25 + $0x1] ss:$0 sm:$0xff]  ;;  %s6183_s25 = smov 64  }
 0x897   :  { %5104 = vrsqrt.f32 %v1747_v34 }
 0x89d   :  { %v5103_v35 = vpop.eup %5102 }
 0x89e   :  { %v1750_v37 = vmul.f32 %v5103_v35, %v1734_v8 }
 0x8a0   :  { %v1758_v40 = vmul.f32 %v4302_v36, %v1750_v37 }
 0x8a1   :  { %v5105_v41 = vpop.eup %5104 }
 0x8a2   :  { %v1751_v43 = vmul.f32 %v5105_v41, %v1735_v7  ;;  %v1766_v44 = vadd.f32 %v4303_v39, %v1758_v40 }
 0x8a4   :  { %v1759_v45 = vmul.f32 %v4302_v36, %v1751_v43  ;;  %4697 = vmatprep.mubr.msk.f32.mxu1 %vm196_vm4, %v1766_v44 }
 0x8a6   :  { %v1767_v46 = vadd.f32 %v4303_v39, %v1759_v45 }
 0x8a8   :  { %4698 = vmatmul.mubr.msk.f32.vlgmr.msra.gmra.mrb[20].mxu1 %vm196_vm4, %v1767_v46 }
 0x8a9   :  { %4947 = vmatpush3.bf16.msra.mxu1 %v4944_v30 }
 0x8aa   :  { %4949 = vmatprep.subr.bf16.mxu1 %v4948_v13 }
 0x8ad   :  { %4951 = vmatpush3.bf16.msra.mxu1 %v4948_v13 }
 0x8ae   :  { %4730 = vmatprep.subr.mxu1 %v5175_v16 }
 0x97b   :  { %v4699_v51 = vpop.f32.mrb[20].mxu1 }
 0x97c   :  { %v1857_v52 = vadd.f32 %v4699_v51, %v4304_v50  ;;  %v1851_v53 = vpop.f32.mrb[21].mxu1 }
 0x97d   :  { %v1852_v54 = vadd.f32 %v4304_v50, %v1851_v53 }
 0x97e   :  { %v1861_v56 = vmax.f32 %v1857_v52, 0.0 }
 0x97f   :  { %v1860_v55 = vmax.f32 %v1852_v54, 0.0 }
 0x981   :  { %4716 = vmatprep.mubr.msk.f32.mxu0 %vm1877_vm9, %v1860_v55 }
 0x982   :  { %4717 = vmatmul.mubr.msk.f32.vlgmr.msra.gmra.mrb[18].mxu0 %vm1877_vm9, %v1861_v56 }
 0x983   :  { %4742 = vmatprep.mubr.msk.f32.mxu0 %vm5176_vm5, %v5175_v16 }
 0xa55   :  { %v4718_v58 = vpop.f32.mrb[18].mxu0 }
 0xa56   :  { %v1956_v59 = vadd.f32 %v4718_v58, %v4307_v57  ;;  %v1950_v60 = vpop.f32.mrb[19].mxu0 }
 0xa57   :  { %v1951_v61 = vadd.f32 %v4307_v57, %v1950_v60 }
 0xa58   :  { %v1960_v62 = vadd.f32 %v1956_v59, %v1767_v46 }
 0xa59   :  { %v1959_v63 = vadd.f32 %v1951_v61, %v1766_v44 }
 0xa5a   :  { %v1966_v0 = vsel %vm196_vm4, %v1960_v62, 0.0 }
 0xa5b   :  { %1967 = vadd.xlane.f32.xlu0 %v1966_v0  ;;  %v1963_v1 = vsel %vm196_vm4, %v1959_v63, 0.0 }
 0xa5c   :  { %1964 = vadd.xlane.f32.xlu1 %v1963_v1 }
 0xae8   :  { %v1968_v2 = vpop.xlane.xlu0 %1967 }
 0xae9   :  { %v1970_v38 = vmul.f32 0.03125, %v1968_v2  ;;  %v1965_v42 = vpop.xlane.xlu1 %1964 }
 0xaea   :  { %v1969_v3 = vmul.f32 0.03125, %v1965_v42 }
 0xaeb   :  { %v1972_v4 = vsub.f32 %v1960_v62, %v1970_v38 }
 0xaec   :  { %v1971_v5 = vsub.f32 %v1959_v63, %v1969_v3 }
 0xaed   :  { %v1974_v6 = vmul.f32 %v1972_v4, %v1972_v4 }
 0xaee   :  { %v1973_v7 = vmul.f32 %v1971_v5, %v1971_v5 }
 0xaef   :  { %v1978_v8 = vsel %vm196_vm4, %v1974_v6, 0.0 }
 0xaf0   :  { %1979 = vadd.xlane.f32.xlu0 %v1978_v8  ;;  %v1975_v9 = vsel %vm196_vm4, %v1973_v7, 0.0 }
 0xaf1   :  { %1976 = vadd.xlane.f32.xlu1 %v1975_v9 }
 0xb7d   :  { %v1980_v14 = vpop.xlane.xlu0 %1979 }
 0xb7e   :  { %v1982_v15 = vmul.f32 0.03125, %v1980_v14  ;;  %v1977_v17 = vpop.xlane.xlu1 %1976 }
 0xb7f   :  { %v1981_v18 = vmul.f32 0.03125, %v1977_v17 }
 0xb80   :  { %v1984_v19 = vadd.f32 1e-05, %v1982_v15 }
 0xb81   :  { %v1983_v20 = vadd.f32 1e-05, %v1981_v18 }
 0xb82   :  { %5106 = vrsqrt.f32 %v1984_v19 }
 0xb83   :  { %5108 = vrsqrt.f32 %v1983_v20 }
 0xb8c   :  { %v5107_v21 = vpop.eup %5106 }
 0xb8d   :  { %v5109_v23 = vpop.eup %5108  ;;  %v1988_v24 = vmul.f32 %v5107_v21, %v1972_v4 }
 0xb8e   :  { %v1987_v25 = vmul.f32 %v5109_v23, %v1971_v5 }
 0xb8f   :  { %v1996_v27 = vmul.f32 %v4310_v22, %v1988_v24 }
 0xb90   :  { %v1995_v28 = vmul.f32 %v4310_v22, %v1987_v25 }
 0xb91   :  { %v5650_v32 = vadd.f32 %v4311_v26, %v1996_v27 }
 0xb92   :  { %v5648_v31 = vadd.f32 %v4311_v26, %v1995_v28 }
 0xb94   :  { %4727 = vmatprep.mubr.msk.f32.mxu1 %vm196_vm4, %v5648_v31 }
 0xb95   :  { %4728 = vmatmul.mubr.msk.f32.vlgmr.msra.gmra.mrb[22].mxu1 %vm196_vm4, %v5650_v32 }
 0xb96   :  { %4732 = vmatprep.mubr.msk.f32.mxu1 %vm5176_vm5, %v5175_v16 }
 0xc68   :  { %v4729_v34 = vpop.f32.mrb[22].mxu1 }
 0xc69   :  { %v5661_v35 = vadd.f32 %v4729_v34, %v4317_v33  ;;  %v2090_v36 = vpop.f32.mrb[23].mxu1 }
 0xc6a   :  { %v5663_v37 = vadd.f32 %v4317_v33, %v2090_v36 }
 0xc6b   :  { %2103 = vrot.lane.b32.xlu0 %v5661_v35, %s5178_s26 }
 0xc6c   :  { %2101 = vrot.lane.b32.xlu1 %v5663_v37, %s5178_s26 }
 0xc6f   :  { %2109 = vrot.lane.b32.xlu0 %v5663_v37, %s5179_s2 }
 0xc70   :  { %2105 = vrot.lane.b32.xlu1 %v5663_v37, %s6181_s4 }
 0xc73   :  { %2113 = vrot.lane.b32.xlu0 %v5663_v37, %s6182_s30 }
 0xc74   :  { %2107 = vrot.lane.b32.xlu1 %v5661_v35, %s6181_s4 }
 0xc78   :  { %2111 = vrot.lane.b32.xlu1 %v5661_v35, %s5179_s2 }
 0xc7c   :  { %2189 = vrot.lane.b32.xlu1 %v5661_v35, %s6182_s30 }
 0xcdd   :  { %v5681_v39 = vpop.permute.xlu0 %2103 }
 0xcde   :  { %2341 = vrot.lane.b32.xlu1 %v5681_v39, %s6182_s30  ;;  %v5685_v40 = vpop.permute.xlu1 %2101 }
 0xcdf   :  { %2265 = vrot.lane.b32.xlu0 %v5685_v40, %s6182_s30 }
 0xce1   :  { %v5689_v41 = vpop.permute.xlu0 %2109 }
 0xce2   :  { %v5691_v43 = vpop.permute.xlu1 %2105 }
 0xce3   :  { %2417 = vrot.lane.b32.xlu0 %v5691_v43, %s6182_s30 }
 0xce5   :  { %v2114_v44 = vpop.permute.xlu0 %2113 }
 0xce6   :  { %4731 = vmatpush3.xpose.msk.msra.mxu1 %vm294_vm6, %v2114_v44  ;;  %v5696_v45 = vpop.permute.xlu1 %2107 }
 0xce7   :  { %2569 = vrot.lane.b32.xlu0 %v5689_v41, %s6182_s30  ;;  %2493 = vrot.lane.b32.xlu1 %v5696_v45, %s6182_s30 }
 0xce8   :  { %4735 = vmatprep.subr.mxu1 %v5175_v16 }
 0xce9   :  { %4733 = vmatmul.mubr.msk.f32.vlgmr.msra.gmra.mrb[24].mxu1 %vm294_vm6, %v5663_v37 }
 0xcea   :  { %v5705_v46 = vpop.permute.xlu1 %2111  ;;  %4737 = vmatprep.mubr.msk.f32.mxu1 %vm5176_vm5, %v5175_v16 }
 0xceb   :  { %2645 = vrot.lane.b32.xlu1 %v5705_v46, %s6182_s30 }
 0xcee   :  { %v2190_v47 = vpop.permute.xlu1 %2189 }
 0xcef   :  { %4736 = vmatpush3.xpose.msk.msra.mxu1 %vm294_vm6, %v2190_v47 }
 0xcf0   :  { %4745 = vmatprep.subr.mxu1 %v5175_v16 }
 0xcf2   :  { %4738 = vmatmul.mubr.msk.f32.vlgmr.msra.gmra.mrb[26].mxu1 %vm294_vm6, %v5661_v35 }
 0xcf3   :  { %4747 = vmatprep.mubr.msk.f32.mxu1 %vm5176_vm5, %v5175_v16 }
 0xd50   :  { %v2342_v48 = vpop.permute.xlu1 %2341 }
 0xd51   :  { %v2266_v49 = vpop.permute.xlu0 %2265  ;;  %4746 = vmatpush3.xpose.msk.msra.mxu1 %vm294_vm6, %v2342_v48 }
 0xd52   :  { %4741 = vmatpush3.xpose.msk.msra.mxu0 %vm294_vm6, %v2266_v49  ;;  %4755 = vmatprep.subr.mxu1 %v5175_v16 }
 0xd53   :  { %4750 = vmatprep.subr.mxu0 %v5175_v16 }
 0xd54   :  { %4748 = vmatmul.mubr.msk.f32.vlgmr.msra.gmra.mrb[28].mxu1 %vm294_vm6, %v5681_v39 }
 0xd55   :  { %4743 = vmatmul.mubr.msk.f32.vlgmr.msra.gmra.mrb[20].mxu0 %vm294_vm6, %v5685_v40  ;;  %v2418_v50 = vpop.permute.xlu0 %2417  ;;  %4757 = vmatprep.mubr.msk.f32.mxu1 %vm5176_vm5, %v5175_v16 }
 0xd56   :  { %4751 = vmatpush3.xpose.msk.msra.mxu0 %vm294_vm6, %v2418_v50  ;;  %4752 = vmatprep.mubr.msk.f32.mxu0 %vm5176_vm5, %v5175_v16 }
 0xd57   :  { %4760 = vmatprep.subr.mxu0 %v5175_v16 }
 0xd59   :  { %4753 = vmatmul.mubr.msk.f32.vlgmr.msra.gmra.mrb[22].mxu0 %vm294_vm6, %v5691_v43  ;;  %v2570_v51 = vpop.permute.xlu0 %2569  ;;  %v2494_v52 = vpop.permute.xlu1 %2493 }
 0xd5a   :  { %4756 = vmatpush3.xpose.msk.msra.mxu1 %vm294_vm6, %v2494_v52  ;;  %4761 = vmatpush3.xpose.msk.msra.mxu0 %vm294_vm6, %v2570_v51 }
 0xd5b   :  { %4762 = vmatprep.mubr.msk.f32.mxu0 %vm5176_vm5, %v5175_v16  ;;  %4765 = vmatprep.subr.mxu1 %v5175_v16 }
 0xd5c   :  { %4770 = vmatprep.subr.mxu0 %v5175_v16 }
 0xd5d   :  { %4758 = vmatmul.mubr.msk.f32.vlgmr.msra.gmra.mrb[30].mxu1 %vm294_vm6, %v5696_v45  ;;  %4763 = vmatmul.mubr.msk.f32.vlgmr.msra.gmra.mrb[24].mxu0 %vm294_vm6, %v5689_v41  ;;  %v2646_v53 = vpop.permute.xlu1 %2645 }
 0xd5e   :  { %4766 = vmatpush3.xpose.msk.msra.mxu1 %vm294_vm6, %v2646_v53  ;;  %4767 = vmatprep.mubr.msk.f32.mxu1 %vm5176_vm5, %v5175_v16 }
 0xd5f   :  { %4775 = vmatprep.subr.mxu1 %v5175_v16  ;;  %4772 = vmatprep.mubr.msk.f32.mxu0 %vm5176_vm5, %v5175_v16 }
 0xd61   :  { %4768 = vmatmul.mubr.msk.f32.vlgmr.msra.gmra.mrb[32].mxu1 %vm294_vm6, %v5705_v46 }
 0xd62   :  { %4777 = vmatprep.mubr.msk.f32.mxu1 %vm5176_vm5, %v5175_v16 }
 0xdbc   :  { %v2185_v54 = vpop.f32.mrb[24].mxu1 }
 0xdbd   :  { %v4734_v55 = vpop.f32.mrb[25].mxu1  ;;  %v2721_v56 = vsel %vm294_vm6, %v2185_v54, -inf }
 0xdbe   :  { %2722 = vmax.xlane.f32.xlu0 %v2721_v56 }
 0xdc5   :  { %v2261_v57 = vpop.f32.mrb[26].mxu1 }
 0xdc6   :  { %v4739_v58 = vpop.f32.mrb[27].mxu1  ;;  %v2724_v59 = vsel %vm294_vm6, %v2261_v57, -inf }
 0xdc7   :  { %2725 = vmax.xlane.f32.xlu1 %v2724_v59 }
 0xe27   :  { %v2413_v60 = vpop.f32.mrb[28].mxu1 }
 0xe28   :  { %v2337_v61 = vpop.f32.mrb[20].mxu0  ;;  %v4749_v62 = vpop.f32.mrb[29].mxu1  ;;  %v2730_v42 = vsel %vm294_vm6, %v2413_v60, -inf }
 0xe29   :  { %v4744_v63 = vpop.f32.mrb[21].mxu0  ;;  %v2727_v0 = vsel %vm294_vm6, %v2337_v61, -inf }
 0xe2a   :  { %2728 = vmax.xlane.f32.xlu0 %v2727_v0 }
 0xe2c   :  { %v2489_v1 = vpop.f32.mrb[22].mxu0 }
 0xe2d   :  { %v4754_v2 = vpop.f32.mrb[23].mxu0  ;;  %v2733_v38 = vsel %vm294_vm6, %v2489_v1, -inf }
 0xe2e   :  { %2734 = vmax.xlane.f32.xlu1 %v2733_v38  ;;  %2731 = vmax.xlane.f32.xlu0 %v2730_v42 }
 0xe30   :  { %v2565_v3 = vpop.f32.mrb[30].mxu1  ;;  %v2641_v4 = vpop.f32.mrb[24].mxu0 }
 0xe31   :  { %v4759_v5 = vpop.f32.mrb[31].mxu1  ;;  %v4764_v6 = vpop.f32.mrb[25].mxu0  ;;  %v2739_v7 = vsel %vm294_vm6, %v2641_v4, -inf  ;;  %v2736_v8 = vsel %vm294_vm6, %v2565_v3, -inf }
 0xe32   :  { %2740 = vmax.xlane.f32.xlu1 %v2739_v7  ;;  %2737 = vmax.xlane.f32.xlu0 %v2736_v8 }
 0xe34   :  { %v2717_v9 = vpop.f32.mrb[32].mxu1 }
 0xe35   :  { %v4769_v10 = vpop.f32.mrb[33].mxu1  ;;  %v2742_v11 = vsel %vm294_vm6, %v2717_v9, -inf }
 0xe36   :  { %2743 = vmax.xlane.f32.xlu0 %v2742_v11 }
 0xe43   :  { %2809 = vrot.lane.b32.xlu1 %v5663_v37, %s6183_s25 }
 0xe47   :  { %2961 = vrot.lane.b32.xlu1 %v5685_v40, %s6183_s25 }
 0xe4b   :  { %3037 = vrot.lane.b32.xlu1 %v5681_v39, %s6183_s25  ;;  %v2723_v12 = vpop.xlane.xlu0 %2722 }
 0xe4c   :  { %2885 = vrot.lane.b32.xlu0 %v5661_v35, %s6183_s25  ;;  %v2745_v13 = vsub.f32 %v2185_v54, %v2723_v12 }
 0xe4e   :  { %v2753_v15 = vmul.f32 1.442695, %v2745_v13 }
 0xe4f   :  { %3189 = vrot.lane.b32.xlu1 %v5696_v45, %s6183_s25 }
 0xe50   :  { %3113 = vrot.lane.b32.xlu0 %v5691_v43, %s6183_s25 }
 0xe54   :  { %v2726_v30 = vpop.xlane.xlu1 %2725 }
 0xe55   :  { %v2746_v29 = vsub.f32 %v2261_v57, %v2726_v30 }
 0xe57   :  { %v2755_v14 = vmul.f32 1.442695, %v2746_v29 }
 0xe59   :  { %5110 = vpow2.f32 %v2755_v14 }
 0xe5a   :  { %5112 = vpow2.f32 %v2753_v15 }
 0xe63   :  { %v5773_v17 = vpop.eup %5110 }
 0xe64   :  { %v2772_v18 = vsel %vm294_vm6, %v5773_v17, 0.0  ;;  %v5777_v19 = vpop.eup %5112 }
 0xe65   :  { %v2769_v20 = vsel %vm294_vm6, %v5777_v19, 0.0 }
 0xe6f   :  { %2773 = vadd.xlane.f32.xlu0 %v2772_v18 }
 0xe73   :  { %2770 = vadd.xlane.f32.xlu1 %v2769_v20 }
 0xeb7   :  { %v2729_v21 = vpop.xlane.xlu0 %2728 }
 0xeb8   :  { %v2747_v22 = vsub.f32 %v2337_v61, %v2729_v21 }
 0xeba   :  { %v2757_v23 = vmul.f32 1.442695, %v2747_v22 }
 0xebb   :  { %v2732_v24 = vpop.xlane.xlu0 %2731  ;;  %v2735_v25 = vpop.xlane.xlu1 %2734 }
 0xebc   :  { %5114 = vpow2.f32 %v2757_v23  ;;  %v2748_v26 = vsub.f32 %v2413_v60, %v2732_v24  ;;  %v2749_v27 = vsub.f32 %v2489_v1, %v2735_v25 }
 0xebe   :  { %v2759_v28 = vmul.f32 1.442695, %v2748_v26  ;;  %v2761_v33 = vmul.f32 1.442695, %v2749_v27  ;;  %v4344_v26 = vld [vmem:[%s6178_s7 + $0x20] sm:$0xff]  ;;  %v4345_v27 = vld [vmem:[%s6178_s7 + $0x28] sm:$0xff] }
 0xebf   :  { %v2738_v34 = vpop.xlane.xlu0 %2737  ;;  %v2741_v35 = vpop.xlane.xlu1 %2740 }
 0xec0   :  { %5116 = vpow2.f32 %v2759_v28  ;;  %v2750_v36 = vsub.f32 %v2565_v3, %v2738_v34  ;;  %v2751_v37 = vsub.f32 %v2641_v4, %v2741_v35  ;;  %v4952_v28 = vpack.c.bf16 %v4345_v27, %v4344_v26  ;;  %v4347_v34 = vld [vmem:[%s6178_s7 + $0x38] sm:$0xff] }
 0xec1   :  { %5118 = vpow2.f32 %v2761_v33  ;;  %v4346_v33 = vld [vmem:[%s6178_s7 + $0x30] sm:$0xff]  ;;  %s6186_s7 = smov 24  }
 0xec2   :  { %v2763_v39 = vmul.f32 1.442695, %v2750_v36  ;;  %v2765_v40 = vmul.f32 1.442695, %v2751_v37  ;;  %v4956_v35 = vpack.c.bf16 %v4347_v34, %v4346_v33 }
 0xec3   :  { %v2744_v43 = vpop.xlane.xlu0 %2743  ;;  %v2810_v44 = vpop.permute.xlu1 %2809 }
 0xec4   :  { %5120 = vpow2.f32 %v2763_v39  ;;  %v2752_v45 = vsub.f32 %v2717_v9, %v2744_v43  ;;  %4771 = vmatpush3.msra.mxu0 %v2810_v44 }
 0xec5   :  { %5122 = vpow2.f32 %v2765_v40  ;;  %4780 = vmatprep.subr.mxu0 %v5175_v16 }
 0xec6   :  { %v5115_v47 = vpop.eup %5114  ;;  %v2767_v48 = vmul.f32 1.442695, %v2752_v45 }
 0xec7   :  { %v2886_v49 = vpop.permute.xlu0 %2885  ;;  %v2775_v50 = vsel %vm294_vm6, %v5115_v47, 0.0  ;;  %v2962_v61 = vpop.permute.xlu1 %2961 }
 0xec8   :  { %5124 = vpow2.f32 %v2767_v48  ;;  %2776 = vadd.xlane.f32.xlu1 %v2775_v50  ;;  %4776 = vmatpush3.msra.mxu1 %v2886_v49 }
 0xec9   :  { %4785 = vmatprep.subr.mxu1 %v5175_v16 }
 0xeca   :  { %v5117_v51 = vpop.eup %5116 }
 0xecb   :  { %v5119_v52 = vpop.eup %5118  ;;  %v2778_v53 = vsel %vm294_vm6, %v5117_v51, 0.0  ;;  %v3038_v62 = vpop.permute.xlu1 %3037 }
 0xecc   :  { %2779 = vadd.xlane.f32.xlu0 %v2778_v53  ;;  %v2781_v54 = vsel %vm294_vm6, %v5119_v52, 0.0  ;;  %v3114_v63 = vpop.permute.xlu0 %3113 }
 0xecd   :  { %2782 = vadd.xlane.f32.xlu1 %v2781_v54 }
 0xece   :  { %v5121_v55 = vpop.eup %5120 }
 0xecf   :  { %v5123_v56 = vpop.eup %5122  ;;  %v2784_v57 = vsel %vm294_vm6, %v5121_v55, 0.0  ;;  %v3190_v0 = vpop.permute.xlu1 %3189 }
 0xed0   :  { %2785 = vadd.xlane.f32.xlu0 %v2784_v57  ;;  %v2787_v58 = vsel %vm294_vm6, %v5123_v56, 0.0 }
 0xed1   :  { %2788 = vadd.xlane.f32.xlu1 %v2787_v58 }
 0xed2   :  { %v5788_v59 = vpop.eup %5124 }
 0xed3   :  { %v2790_v60 = vsel %vm294_vm6, %v5788_v59, 0.0 }
 0xed4   :  { %2791 = vadd.xlane.f32.xlu0 %v2790_v60 }
 0xee2   :  { %3341 = vrot.lane.b32.xlu1 %v5705_v46, %s6183_s25 }
 0xeea   :  { %3265 = vrot.lane.b32.xlu0 %v5689_v41, %s6183_s25 }
 0xefc   :  { %v2774_v1 = vpop.xlane.xlu0 %2773 }
 0xefd   :  { %5126 = vrcp.f32 %v2774_v1 }
 0xf00   :  { %v2771_v2 = vpop.xlane.xlu1 %2770 }
 0xf01   :  { %5128 = vrcp.f32 %v2771_v2 }
 0xf07   :  { %v5127_v38 = vpop.eup %5126 }
 0xf08   :  { %v2802_v42 = vmul.f32 %v5127_v38, %v5773_v17 }
 0xf0a   :  { %4778 = vmatmul.mubr.msk.f32.vlgmr.msra.gmra.mrb[34].mxu1 %vm294_vm6, %v2802_v42 }
 0xf0b   :  { %v5129_v3 = vpop.eup %5128  ;;  %4786 = vmatpush3.msra.mxu1 %v3038_v62  ;;  %4787 = vmatprep.mubr.msk.f32.mxu1 %vm5176_vm5, %v5175_v16 }
 0xf0c   :  { %v2801_v41 = vmul.f32 %v5129_v3, %v5777_v19  ;;  %4795 = vmatprep.subr.mxu1 %v5175_v16 }
 0xf0e   :  { %4773 = vmatmul.mubr.msk.f32.vlgmr.msra.gmra.mrb[26].mxu0 %vm294_vm6, %v2801_v41 }
 0xf0f   :  { %4781 = vmatpush3.msra.mxu0 %v2962_v61  ;;  %4782 = vmatprep.mubr.msk.f32.mxu0 %vm5176_vm5, %v5175_v16 }
 0xf10   :  { %4790 = vmatprep.subr.mxu0 %v5175_v16 }
 0xf55   :  { %v2777_v46 = vpop.xlane.xlu1 %2776 }
 0xf56   :  { %5130 = vrcp.f32 %v2777_v46 }
 0xf59   :  { %v2780_v4 = vpop.xlane.xlu0 %2779 }
 0xf5a   :  { %5132 = vrcp.f32 %v2780_v4  ;;  %v2783_v5 = vpop.xlane.xlu1 %2782 }
 0xf5b   :  { %5134 = vrcp.f32 %v2783_v5 }
 0xf5d   :  { %v2786_v6 = vpop.xlane.xlu0 %2785 }
 0xf5e   :  { %5136 = vrcp.f32 %v2786_v6  ;;  %v2789_v7 = vpop.xlane.xlu1 %2788 }
 0xf5f   :  { %5138 = vrcp.f32 %v2789_v7 }
 0xf60   :  { %v5131_v8 = vpop.eup %5130 }
 0xf61   :  { %v2803_v9 = vmul.f32 %v5131_v8, %v5115_v47  ;;  %v2792_v10 = vpop.xlane.xlu0 %2791 }
 0xf62   :  { %5140 = vrcp.f32 %v2792_v10  ;;  %v3342_v19 = vpop.permute.xlu1 %3341 }
 0xf63   :  { %4783 = vmatmul.mubr.msk.f32.vlgmr.msra.gmra.mrb[28].mxu0 %vm294_vm6, %v2803_v9 }
 0xf64   :  { %v5133_v11 = vpop.eup %5132  ;;  %4791 = vmatpush3.msra.mxu0 %v3114_v63  ;;  %4792 = vmatprep.mubr.msk.f32.mxu0 %vm5176_vm5, %v5175_v16 }
 0xf65   :  { %v5135_v30 = vpop.eup %5134  ;;  %v2804_v29 = vmul.f32 %v5133_v11, %v5117_v51  ;;  %4800 = vmatprep.subr.mxu0 %v5175_v16  ;;  %v3266_v13 = vpop.permute.xlu0 %3265 }
 0xf66   :  { %v2805_v12 = vmul.f32 %v5135_v30, %v5119_v52 }
 0xf67   :  { %4788 = vmatmul.mubr.msk.f32.vlgmr.msra.gmra.mrb[36].mxu1 %vm294_vm6, %v2804_v29 }
 0xf68   :  { %v5137_v14 = vpop.eup %5136  ;;  %4793 = vmatmul.mubr.msk.f32.vlgmr.msra.gmra.mrb[30].mxu0 %vm294_vm6, %v2805_v12  ;;  %4796 = vmatpush3.msra.mxu1 %v3190_v0  ;;  %v4349_v0 = vld [vmem:[%s6179_s0 + $0x1] ss:$0 sm:$0xff]  ;;  %v4357_v12 = vld [vmem:[%s6132_s11 + $0x28] sm:$0xff] }
 0xf69   :  { %v5139_v15 = vpop.eup %5138  ;;  %v2806_v17 = vmul.f32 %v5137_v14, %v5121_v55  ;;  %4801 = vmatpush3.msra.mxu0 %v3266_v13  ;;  %4797 = vmatprep.mubr.msk.f32.mxu1 %vm5176_vm5, %v5175_v16  ;;  %v4358_v14 = vld [vmem:[%s6132_s11 + $0x30] sm:$0xff] }
 0xf6a   :  { %v2807_v18 = vmul.f32 %v5139_v15, %v5123_v56  ;;  %4802 = vmatprep.mubr.msk.f32.mxu0 %vm5176_vm5, %v5175_v16  ;;  %4805 = vmatprep.subr.mxu1 %v5175_v16  ;;  %v4359_v15 = vld [vmem:[%s6132_s11 + $0x38] sm:$0xff] }
 0xf6b   :  { %4798 = vmatmul.mubr.msk.f32.vlgmr.msra.gmra.mrb[38].mxu1 %vm294_vm6, %v2806_v17  ;;  %4953 = vmatprep.subr.bf16.mxu0 %v4952_v28  ;;  %v4964_v17 = vpack.c.bf16 %v4359_v15, %v4358_v14  ;;  %v3902_v14 = vld [vmem:[%s6136_s15 + $0x98] sm:$0xff] }
 0xf6c   :  { %v5141_v20 = vpop.eup %5140  ;;  %4803 = vmatmul.mubr.msk.f32.vlgmr.msra.gmra.mrb[32].mxu0 %vm294_vm6, %v2807_v18  ;;  %4806 = vmatpush3.msra.mxu1 %v3342_v19  ;;  %v4364_v18 = vld [vmem:[%s6134_s13 + $0x40] sm:$0xff]  ;;  %v4365_v19 = vld [vmem:[%s6134_s13 + $0x48] sm:$0xff] }
 0xf6d   :  { %v2808_v21 = vmul.f32 %v5141_v20, %v5788_v59  ;;  %4807 = vmatprep.mubr.msk.f32.mxu1 %vm5176_vm5, %v5175_v16  ;;  %4955 = vmatpush3.bf16.msra.mxu0 %v4952_v28  ;;  %v4366_v20 = vld [vmem:[%s6134_s13 + $0x50] sm:$0xff] }
 0xf6e   :  { %4957 = vmatprep.subr.bf16.mxu0 %v4956_v35 }
 0xf6f   :  { %4808 = vmatmul.mubr.msk.f32.vlgmr.msra.gmra.mrb[40].mxu1 %vm294_vm6, %v2808_v21  ;;  %v4968_v21 = vpack.c.bf16 %v4365_v19, %v4364_v18  ;;  %v3885_v18 = vld [vmem:[%s6136_s15 + $0x10] sm:$0xff]  ;;  %v3886_v19 = vld [vmem:[%s6136_s15 + $0x18] sm:$0xff] }
 0xf71   :  { %4959 = vmatpush3.bf16.msra.mxu0 %v4956_v35 }
 0xf72   :  { %4969 = vmatprep.subr.bf16.mxu0 %v4968_v21 }
 0xfdd   :  { %v2957_v22 = vpop.f32.mrb[34].mxu1 }
 0xfde   :  { %v4779_v23 = vpop.f32.mrb[35].mxu1 }
 0xfe1   :  { %v2881_v24 = vpop.f32.mrb[26].mxu0 }
 0xfe2   :  { %v4774_v25 = vpop.f32.mrb[27].mxu0 }
 0xfe3   :  { %v4369_v25 = vld [vmem:[%s6134_s13 + $0x68] sm:$0xff] }
0x1036   :  { %v3033_v36 = vpop.f32.mrb[28].mxu0 }
0x1037   :  { %3419 = vrot.lane.b32.xlu0 %v3033_v36, %s6184_s6  ;;  %v4784_v37 = vpop.f32.mrb[29].mxu0 }
0x103a   :  { %v3109_v39 = vpop.f32.mrb[36].mxu1 }
0x103b   :  { %v3185_v40 = vpop.f32.mrb[30].mxu0  ;;  %3421 = vrot.lane.b32.xlu1 %v3109_v39, %s6184_s6  ;;  %v4789_v43 = vpop.f32.mrb[37].mxu1  ;;  %v4354_v39 = vld [vmem:[%s6180_s29 + $0x1] ss:$0 sm:$0xff]  ;;  %s6187_s29 = sld [smem:[#allocation13_spill]] }
0x103c   :  { %3427 = vrot.lane.b32.xlu0 %v3185_v40, %s6185_s18  ;;  %v4794_v44 = vpop.f32.mrb[31].mxu0  ;;  %v4355_v43 = vld [vmem:[%s6129_s8 + $0x1] ss:$0 sm:$0xff] }
0x103e   :  { %v3261_v45 = vpop.f32.mrb[38].mxu1 }
0x103f   :  { %v3337_v47 = vpop.f32.mrb[32].mxu0  ;;  %3429 = vrot.lane.b32.xlu1 %v3261_v45, %s6185_s18  ;;  %v4799_v48 = vpop.f32.mrb[39].mxu1 }
0x1040   :  { %3435 = vrot.lane.b32.xlu0 %v3337_v47, %s6186_s7  ;;  %v4804_v49 = vpop.f32.mrb[33].mxu0 }
0x1042   :  { %v3413_v50 = vpop.f32.mrb[40].mxu1 }
0x1043   :  { %3437 = vrot.lane.b32.xlu1 %v3413_v50, %s6186_s7  ;;  %v4809_v51 = vpop.f32.mrb[41].mxu1 }
0x1044   :  { %v4370_v51 = vld [vmem:[%s6134_s13 + $0x70] sm:$0xff] }
0x10a9   :  { %v3420_v52 = vpop.permute.xlu0 %3419 }
0x10aa   :  { %v3441_v55 = vsel %vm294_vm6, %v2881_v24, %v3420_v52  ;;  %v4368_v24 = vld [vmem:[%s6134_s13 + $0x60] sm:$0xff]  ;;  %v4371_v52 = vld [vmem:[%s6134_s13 + $0x78] sm:$0xff] }
0x10ab   :  { %v4976_v26 = vpack.c.bf16 %v4369_v25, %v4368_v24  ;;  %v3887_v24 = vld [vmem:[%s6136_s15 + $0x20] sm:$0xff]  ;;  %v3888_v25 = vld [vmem:[%s6136_s15 + $0x28] sm:$0xff] }
0x10ad   :  { %v3422_v53 = vpop.permute.xlu1 %3421 }
0x10ae   :  { %v3428_v54 = vpop.permute.xlu0 %3427  ;;  %v3442_v60 = vsel %vm294_vm6, %v2957_v22, %v3422_v53  ;;  %v4367_v22 = vld [vmem:[%s6134_s13 + $0x58] sm:$0xff]  ;;  %v4980_v53 = vpack.c.bf16 %v4371_v52, %v4370_v51 }
0x10af   :  { %v3443_v57 = vsel %vm1623_vm7, %v3441_v55, %v3428_v54  ;;  %v4972_v23 = vpack.c.bf16 %v4367_v22, %v4366_v20  ;;  %v4361_v54 = vld [vmem:[%s6133_s12 + $0x1] ss:$0 sm:$0xff]  ;;  %v4990_v22 = vpack.c.bf16 %v3886_v19, %v3885_v18  ;;  %v3894_v51 = vld [vmem:[%s6136_s15 + $0x58] sm:$0xff] }
0x10b0   :  { %v3903_v20 = vld [vmem:[%s6136_s15 + $0xa0] sm:$0xff] }
0x10b1   :  { %v3430_v56 = vpop.permute.xlu1 %3429 }
0x10b2   :  { %v3436_v58 = vpop.permute.xlu0 %3435  ;;  %v3444_v61 = vsel %vm1623_vm7, %v3442_v60, %v3430_v56 }
0x10b3   :  { %v3445_v59 = vsel %vm1626_vm8, %v3443_v57, %v3436_v58 }
0x10b4   :  { %4818 = vmatprep.mubr.msk.f32.mxu0 %vm196_vm4, %v3445_v59 }
0x10b5   :  { %v3438_v62 = vpop.permute.xlu1 %3437 }
0x10b6   :  { %v3446_v63 = vsel %vm1626_vm8, %v3444_v61, %v3438_v62  ;;  %v4373_v61 = vld [vmem:[%s6135_s14 + $0x1] ss:$0 sm:$0xff] }
0x10b7   :  { %4819 = vmatmul.mubr.msk.f32.vlgmr.msra.gmra.mrb[34].mxu0 %vm196_vm4, %v3446_v63 }
0x10b8   :  { %4971 = vmatpush3.bf16.msra.mxu0 %v4968_v21  ;;  %v3904_v21 = vld [vmem:[%s6136_s15 + $0xa8] sm:$0xff] }
0x10b9   :  { %4973 = vmatprep.subr.bf16.mxu0 %v4972_v23 }
0x10bc   :  { %4975 = vmatpush3.bf16.msra.mxu0 %v4972_v23  ;;  %v4992_v23 = vpack.c.bf16 %v3904_v21, %v3903_v20 }
0x10bd   :  { %4977 = vmatprep.subr.bf16.mxu0 %v4976_v26 }
0x10c0   :  { %4979 = vmatpush3.bf16.msra.mxu0 %v4976_v26  ;;  %v3905_v26 = vld [vmem:[%s6136_s15 + $0xb0] sm:$0xff] }
0x10c1   :  { %4981 = vmatprep.subr.bf16.mxu0 %v4980_v53 }
0x10c4   :  { %4983 = vmatpush3.bf16.msra.mxu0 %v4980_v53 }
0x118a   :  { %v4820_v1 = vpop.f32.mrb[34].mxu0 }
0x118b   :  { %v3538_v2 = vadd.f32 %v4820_v1, %v4349_v0  ;;  %v3532_v38 = vpop.f32.mrb[35].mxu0 }
0x118c   :  { %v3533_v42 = vadd.f32 %v4349_v0, %v3532_v38 }
0x118d   :  { %v3542_v3 = vadd.f32 %v3538_v2, %v5650_v32 }
0x118e   :  { %v3541_v41 = vadd.f32 %v3533_v42, %v5648_v31  ;;  %v4356_v31 = vld [vmem:[%s6132_s11 + $0x20] sm:$0xff] }
0x118f   :  { %v3550_v46 = vsel %vm196_vm4, %v3542_v3, 0.0  ;;  %v4960_v13 = vpack.c.bf16 %v4357_v12, %v4356_v31  ;;  %v3884_v12 = vld [vmem:[%s6136_s15 + $0x8] sm:$0xff] }
0x1190   :  { %3551 = vadd.xlane.f32.xlu1 %v3550_v46  ;;  %v3547_v4 = vsel %vm196_vm4, %v3541_v41, 0.0 }
0x1191   :  { %3548 = vadd.xlane.f32.xlu0 %v3547_v4  ;;  %4961 = vmatprep.subr.bf16.mxu1 %v4960_v13 }
0x1192   :  { %4963 = vmatpush3.bf16.msra.mxu1 %v4960_v13  ;;  %v3901_v13 = vld [vmem:[%s6136_s15 + $0x90] sm:$0xff] }
0x1193   :  { %4965 = vmatprep.subr.bf16.mxu1 %v4964_v17 }
0x1196   :  { %4967 = vmatpush3.bf16.msra.mxu1 %v4964_v17  ;;  %v4988_v17 = vpack.c.bf16 %v3902_v14, %v3901_v13 }
0x121d   :  { %v3552_v5 = vpop.xlane.xlu1 %3551 }
0x121e   :  { %v3554_v6 = vmul.f32 0.03125, %v3552_v5  ;;  %v3549_v7 = vpop.xlane.xlu0 %3548 }
0x121f   :  { %v3553_v8 = vmul.f32 0.03125, %v3549_v7 }
0x1220   :  { %v3556_v9 = vsub.f32 %v3542_v3, %v3554_v6 }
0x1221   :  { %v3555_v10 = vsub.f32 %v3541_v41, %v3553_v8 }
0x1222   :  { %v3558_v29 = vmul.f32 %v3556_v9, %v3556_v9 }
0x1223   :  { %v3557_v11 = vmul.f32 %v3555_v10, %v3555_v10 }
0x1224   :  { %v3562_v32 = vsel %vm196_vm4, %v3558_v29, 0.0  ;;  %v3900_v29 = vld [vmem:[%s6136_s15 + $0x88] sm:$0xff] }
0x1225   :  { %v3559_v30 = vsel %vm196_vm4, %v3557_v11, 0.0 }
0x1226   :  { %3560 = vadd.xlane.f32.xlu0 %v3559_v30  ;;  %v3899_v30 = vld [vmem:[%s6136_s15 + $0x80] sm:$0xff] }
0x1227   :  { %v4984_v31 = vpack.c.bf16 %v3900_v29, %v3899_v30 }
0x1229   :  { %4985 = vmatprep.subr.bf16.mxu1 %v4984_v31 }
0x122a   :  { %3563 = vadd.xlane.f32.xlu0 %v3562_v32  ;;  %v3883_v32 = vld [vmem:[%s6136_s15] sm:$0xff] }
0x122b   :  { %v4986_v15 = vpack.c.bf16 %v3884_v12, %v3883_v32 }
0x12b3   :  { %v3561_v27 = vpop.xlane.xlu0 %3560 }
0x12b4   :  { %v3565_v28 = vmul.f32 0.03125, %v3561_v27  ;;  %v3906_v27 = vld [vmem:[%s6136_s15 + $0xb8] sm:$0xff] }
0x12b6   :  { %v3567_v33 = vadd.f32 1e-05, %v3565_v28  ;;  %v4994_v28 = vpack.c.bf16 %v3888_v25, %v3887_v24 }
0x12b7   :  { %v3564_v34 = vpop.xlane.xlu0 %3563 }
0x12b8   :  { %5142 = vrsqrt.f32 %v3567_v33  ;;  %v3566_v35 = vmul.f32 0.03125, %v3564_v34  ;;  %v4996_v33 = vpack.c.bf16 %v3906_v27, %v3905_v26  ;;  %v3889_v34 = vld [vmem:[%s6136_s15 + $0x30] sm:$0xff] }
0x12ba   :  { %v3568_v36 = vadd.f32 1e-05, %v3566_v35  ;;  %v3890_v35 = vld [vmem:[%s6136_s15 + $0x38] sm:$0xff] }
0x12bc   :  { %5144 = vrsqrt.f32 %v3568_v36  ;;  %v3907_v36 = vld [vmem:[%s6136_s15 + $0xc0] sm:$0xff] }
0x12c2   :  { %v5143_v37 = vpop.eup %5142 }
0x12c3   :  { %v3571_v40 = vmul.f32 %v5143_v37, %v3555_v10  ;;  %v3908_v37 = vld [vmem:[%s6136_s15 + $0xc8] sm:$0xff] }
0x12c5   :  { %v3579_v44 = vmul.f32 %v4354_v39, %v3571_v40  ;;  %v5000_v40 = vpack.c.bf16 %v3908_v37, %v3907_v36 }
0x12c6   :  { %v5145_v45 = vpop.eup %5144 }
0x12c7   :  { %v3572_v47 = vmul.f32 %v5145_v45, %v3556_v9  ;;  %v3587_v48 = vadd.f32 %v4355_v43, %v3579_v44  ;;  %v3892_v44 = vld [vmem:[%s6136_s15 + $0x48] sm:$0xff]  ;;  %v3909_v45 = vld [vmem:[%s6136_s15 + $0xd0] sm:$0xff] }
0x12c9   :  { %v3580_v49 = vmul.f32 %v4354_v39, %v3572_v47  ;;  %4829 = vmatprep.mubr.msk.f32.mxu1 %vm196_vm4, %v3587_v48  ;;  %v4998_v39 = vpack.c.bf16 %v3890_v35, %v3889_v34  ;;  %v3910_v47 = vld [vmem:[%s6136_s15 + $0xd8] sm:$0xff] }
0x12cb   :  { %v3588_v50 = vadd.f32 %v4355_v43, %v3580_v49  ;;  %v3891_v43 = vld [vmem:[%s6136_s15 + $0x40] sm:$0xff]  ;;  %v5004_v49 = vpack.c.bf16 %v3910_v47, %v3909_v45 }
0x12cd   :  { %4830 = vmatmul.mubr.msk.f32.vlgmr.msra.gmra.mrb[42].mxu1 %vm196_vm4, %v3588_v50 }
0x12ce   :  { %4987 = vmatpush3.bf16.msra.mxu1 %v4986_v15 }
0x12cf   :  { %4989 = vmatprep.subr.bf16.mxu1 %v4988_v17 }
0x12d2   :  { %4991 = vmatpush3.bf16.msra.mxu1 %v4990_v22 }
0x12d3   :  { %4993 = vmatprep.subr.bf16.mxu1 %v4992_v23 }
0x12d6   :  { %4995 = vmatpush3.bf16.msra.mxu1 %v4994_v28 }
0x12d7   :  { %4997 = vmatprep.subr.bf16.mxu1 %v4996_v33 }
0x12da   :  { %4999 = vmatpush3.bf16.msra.mxu1 %v4998_v39 }
0x12db   :  { %5001 = vmatprep.subr.bf16.mxu1 %v5000_v40 }
0x13a0   :  { %v4831_v55 = vpop.f32.mrb[42].mxu1 }
0x13a1   :  { %v3680_v56 = vadd.f32 %v4831_v55, %v4361_v54  ;;  %v3674_v57 = vpop.f32.mrb[43].mxu1 }
0x13a2   :  { %v3675_v58 = vadd.f32 %v4361_v54, %v3674_v57 }
0x13a3   :  { %v3684_v60 = vmax.f32 %v3680_v56, 0.0 }
0x13a4   :  { %v3683_v59 = vmax.f32 %v3675_v58, 0.0 }
0x13a6   :  { %4848 = vmatprep.mubr.msk.f32.mxu0 %vm1877_vm9, %v3683_v59 }
0x13a7   :  { %4849 = vmatmul.mubr.msk.f32.vlgmr.msra.gmra.mrb[36].mxu0 %vm1877_vm9, %v3684_v60  ;;  %v4378_v60 = vld [vmem:[%s6130_s9 + $0x1] ss:$0 sm:$0xff] }
0x13a8   :  { %4859 = vmatprep.mubr.msk.f32.mxu0 %vm5176_vm5, %v5175_v16 }
0x147a   :  { %v4850_v62 = vpop.f32.mrb[36].mxu0 }
0x147b   :  { %v3780_v63 = vadd.f32 %v4850_v62, %v4373_v61  ;;  %v3774_v0 = vpop.f32.mrb[37].mxu0  ;;  %v3912_v62 = vld [vmem:[%s6136_s15 + $0xe8] sm:$0xff] }
0x147c   :  { %v3775_v1 = vadd.f32 %v4373_v61, %v3774_v0  ;;  %v3911_v61 = vld [vmem:[%s6136_s15 + $0xe0] sm:$0xff] }
0x147d   :  { %v3784_v2 = vadd.f32 %v3780_v63, %v3588_v50  ;;  %v3893_v50 = vld [vmem:[%s6136_s15 + $0x50] sm:$0xff] }
0x147e   :  { %v3783_v38 = vadd.f32 %v3775_v1, %v3587_v48  ;;  %v5002_v48 = vpack.c.bf16 %v3892_v44, %v3891_v43  ;;  %v5006_v52 = vpack.c.bf16 %v3894_v51, %v3893_v50  ;;  %v5008_v1 = vpack.c.bf16 %v3912_v62, %v3911_v61  ;;  %v3995_v62 = vld [vmem:[%s6138_s17 + $0x10] sm:$0xff] }
0x147f   :  { %v3792_v42 = vsel %vm196_vm4, %v3784_v2, 0.0 }
0x1480   :  { %3793 = vadd.xlane.f32.xlu0 %v3792_v42  ;;  %v3789_v3 = vsel %vm196_vm4, %v3783_v38, 0.0  ;;  %5003 = vmatpush3.bf16.msra.mxu1 %v5002_v48  ;;  %v4379_v42 = vld [vmem:[%s6131_s10 + $0x1] ss:$0 sm:$0xff] }
0x1481   :  { %3790 = vadd.xlane.f32.xlu1 %v3789_v3  ;;  %5005 = vmatprep.subr.bf16.mxu1 %v5004_v49 }
0x1484   :  { %5007 = vmatpush3.bf16.msra.mxu1 %v5006_v52 }
0x1485   :  { %5009 = vmatprep.subr.bf16.mxu1 %v5008_v1 }
0x150d   :  { %v3794_v41 = vpop.xlane.xlu0 %3793 }
0x150e   :  { %v3796_v46 = vmul.f32 0.03125, %v3794_v41  ;;  %v3791_v4 = vpop.xlane.xlu1 %3790 }
0x150f   :  { %v3795_v5 = vmul.f32 0.03125, %v3791_v4 }
0x1510   :  { %v5914_v6 = vsub.f32 %v3784_v2, %v3796_v46  ;;  %v3895_v2 = vld [vmem:[%s6136_s15 + $0x60] sm:$0xff] }
0x1511   :  { %v5916_v7 = vsub.f32 %v3783_v38, %v3795_v5  ;;  %v3896_v38 = vld [vmem:[%s6136_s15 + $0x68] sm:$0xff]  ;;  %v3913_v5 = vld [vmem:[%s6136_s15 + $0xf0] sm:$0xff] }
0x1512   :  { %v3800_v8 = vmul.f32 %v5914_v6, %v5914_v6  ;;  %v5010_v41 = vpack.c.bf16 %v3896_v38, %v3895_v2  ;;  %v4380_v2 = vld [vmem:[%s6137_s16] ss:$0 sm:$0xff] }
0x1513   :  { %v3799_v9 = vmul.f32 %v5916_v7, %v5916_v7 }
0x1514   :  { %v3804_v10 = vsel %vm196_vm4, %v3800_v8, 0.0  ;;  %5011 = vmatpush3.bf16.msra.mxu1 %v5010_v41  ;;  %v3897_v8 = vld [vmem:[%s6136_s15 + $0x70] sm:$0xff]  ;;  %v4079_v41 = vld [vmem:[%s6140_s19 + $0x8] sm:$0xff] }
0x1515   :  { %3805 = vadd.xlane.f32.xlu0 %v3804_v10  ;;  %v3801_v11 = vsel %vm196_vm4, %v3799_v9, 0.0 }
0x1516   :  { %3802 = vadd.xlane.f32.xlu1 %v3801_v11 }
0x15a2   :  { %v3806_v53 = vpop.xlane.xlu0 %3805 }
0x15a3   :  { %v3808_v54 = vmul.f32 0.03125, %v3806_v53  ;;  %v3803_v55 = vpop.xlane.xlu1 %3802 }
0x15a4   :  { %v3807_v56 = vmul.f32 0.03125, %v3803_v55 }
0x15a5   :  { %v3810_v57 = vadd.f32 1e-05, %v3808_v54 }
0x15a6   :  { %v3809_v58 = vadd.f32 1e-05, %v3807_v56 }
0x15a7   :  { %5146 = vrsqrt.f32 %v3810_v57 }
0x15a8   :  { %5148 = vrsqrt.f32 %v3809_v58  ;;  %v5186_v58 = vmov 0.0|0.0  }
0x15a9   :  { %5016 = vmatprep.subr.bf16.mxu0 %v5186_v58 }
0x15b1   :  { %v5147_v59 = vpop.eup %5146 }
0x15b2   :  { %v5149_v63 = vpop.eup %5148  ;;  %v3814_v0 = vmul.f32 %v5147_v59, %v5914_v6  ;;  %v3914_v6 = vld [vmem:[%s6136_s15 + $0xf8] sm:$0xff]  ;;  %v3993_v59 = vld [vmem:[%s6138_s17] sm:$0xff] }
0x15b3   :  { %v3813_v3 = vmul.f32 %v5149_v63, %v5916_v7  ;;  %v5012_v10 = vpack.c.bf16 %v3914_v6, %v3913_v5  ;;  %v3898_v7 = vld [vmem:[%s6136_s15 + $0x78] sm:$0xff]  ;;  %s5185_s15 = smov 32   ;;  %v4080_v6 = vld [vmem:[%s6140_s19 + $0x10] sm:$0xff] }
0x15b4   :  { %v3822_v46 = vmul.f32 %v4378_v60, %v3814_v0  ;;  %v5014_v30 = vpack.c.bf16 %v3898_v7, %v3897_v8  ;;  %v3996_v63 = vld [vmem:[%s6138_s17 + $0x18] sm:$0xff]  ;;  %v4083_v7 = vld [vmem:[%s6140_s19 + $0x28] sm:$0xff] }
0x15b5   :  { %v3821_v4 = vmul.f32 %v4378_v60, %v3813_v3  ;;  %5013 = vmatprep.subr.bf16.mxu1 %v5012_v10  ;;  %v3994_v60 = vld [vmem:[%s6138_s17 + $0x8] sm:$0xff]  ;;  %v5020_v0 = vpack.c.bf16 %v3996_v63, %v3995_v62  ;;  %v4078_v3 = vld [vmem:[%s6140_s19] sm:$0xff]  ;;  %v4081_v8 = vld [vmem:[%s6140_s19 + $0x18] sm:$0xff]  ;;  %s5187_s17 = smov [#allocation2]  }
0x15b6   :  { %v3830_v9 = vadd.f32 %v4379_v42, %v3822_v46  ;;  %5015 = vmatpush3.bf16.msra.mxu1 %v5014_v30  ;;  %v5017_v61 = vpack.c.bf16 %v3994_v60, %v3993_v59  ;;  %v4082_v10 = vld [vmem:[%s6140_s19 + $0x20] sm:$0xff]  ;;  %v4084_v30 = vld [vmem:[%s6140_s19 + $0x30] sm:$0xff]  ;;  %s4259_s14 = sshll.u32 %s5187_s17, 4  ;;  %s4260_s14 = int_to_ptr.vmem [resolvable:$true] %s4259_s14 }
0x15b7   :  { %v3829_v11 = vadd.f32 %v4379_v42, %v3821_v4  ;;  %5034 = vmatprep.subr.bf16.mxu1 %v5186_v58  ;;  %v5023_v4 = vpack.c.bf16 %v4079_v41, %v4078_v3  ;;  %p5155_p1 = scmp.lt.s32.totalorder %s4260_s14, %s4260_s14 }
0x15b8   :  { %v3843_v29 = vrot.slane %v3830_v9, 1  ;;  %v3865_v32 = vrot.slane %v3830_v9, 5  ;;  %v3859_v31 = vrot.slane %v3830_v9, 4  ;;  %v3849_v12 = vrot.slane %v3830_v9, 2  ;;  %5018 = vmatpush3.bf16.msra.mxu0 %v5017_v61 }
0x15b9   :  { %v3842_v13 = vrot.slane %v3829_v11, 2  ;;  %v3864_v14 = vrot.slane %v3829_v11, 6  ;;  %v3837_v15 = vrot.slane %v3829_v11, 1  ;;  %v3858_v17 = vrot.slane %v3829_v11, 5  ;;  %5019 = vmatprep.subr.bf16.mxu0 %v5186_v58 }
0x15ba   :  { %v3848_v18 = vrot.slane %v3829_v11, 3  ;;  %v3870_v19 = vrot.slane %v3829_v11, 7  ;;  %v3871_v20 = vrot.slane %v3830_v9, 6  ;;  %v3833_v21 = vrot.slane %v3830_v9, 7 }
0x15bb   :  { %v3844_v22 = vsel %vm3834_vm10, %v3843_v29, %v3842_v13  ;;  %v3866_v23 = vsel %vm3834_vm10, %v3865_v32, %v3864_v14  ;;  %v3838_v24 = vsel %vm3834_vm10, %v3830_v9, %v3837_v15  ;;  %v3860_v25 = vsel %vm3834_vm10, %v3859_v31, %v3858_v17  ;;  %v4167_v32 = vld [vmem:[%s6142_s21] sm:$0xff]  ;;  %v4168_v31 = vld [vmem:[%s6142_s21 + $0x8] sm:$0xff] }
0x15bc   :  { %v5060_v26 = vpack.i.bf16 %v3844_v22, %v3866_v23  ;;  %v5055_v27 = vpack.i.bf16 %v3838_v24, %v3860_v25  ;;  %v3850_v28 = vsel %vm3834_vm10, %v3849_v12, %v3848_v18  ;;  %v3872_v33 = vsel %vm3834_vm10, %v3871_v20, %v3870_v19  ;;  %5021 = vmatpush3.bf16.msra.mxu0 %v5020_v0  ;;  %v4381_v13 = vld [vmem:[%s6187_s29] ss:$0 sm:$0xff]  ;;  %v4169_v19 = vld [vmem:[%s6142_s21 + $0x10] sm:$0xff]  ;;  %v4170_v20 = vld [vmem:[%s6142_s21 + $0x18] sm:$0xff]  ;;  %s5150_s21 = scalar_lea.vmem %s4260_s14, 32 }
0x15bd   :  { %v3835_v34 = vsel %vm3834_vm10, %v3833_v21, %v3829_v11  ;;  %v3854_v35 = vrot.slane %v3829_v11, 4  ;;  %v3855_v36 = vrot.slane %v3830_v9, 3  ;;  %v5065_v39 = vpack.i.bf16 %v3850_v28, %v3872_v33  ;;  %5022 = vmatprep.subr.bf16.mxu0 %v5186_v58  ;;  %v4383_v22 = vld [vmem:[%s6141_s20] ss:$0 sm:$0xff]  ;;  %p5151_p0 = scmp.ne.s32.totalorder %s4260_s14, %s5150_s21  ;;  %p5156_p2 = scmp.lt.s32.totalorder %s5150_s21, %s5150_s21 }
0x15be   :  { %5061 = vrot.lane.b32.xlu0 %v5060_v26, %s6183_s25  ;;  %5056 = vrot.lane.b32.xlu1 %v5055_v27, %s5185_s15  ;;  %v5026_v9 = vpack.c.bf16 %v4081_v8, %v4080_v6  ;;  %v5029_v11 = vpack.c.bf16 %v4083_v7, %v4082_v10  ;;  %v5035_v12 = vpack.c.bf16 %v4168_v31, %v4167_v32  ;;  %v4385_v27 = vld [vmem:[%s6143_s22] ss:$0 sm:$0xff] }
0x15bf   :  { %v3856_v37 = vsel %vm3834_vm10, %v3855_v36, %v3854_v35  ;;  %v5038_v21 = vpack.c.bf16 %v4170_v20, %v4169_v19  ;;  %p5157_p3 = por %p5156_p2, %p5155_p1 }
0x15c1   :  { %p5158_p4 = pnand %p5157_p3, %p5151_p0 }
0x15c2   :  { %5066 = vrot.lane.b32.xlu1 %v5065_v39, %s6182_s30 }
0x1630   :  { %v5062_v40 = vpop.permute.xlu0 %5061  ;;  %v5057_v43 = vpop.permute.xlu1 %5056 }
0x1631   :  { %v5059_v44 = vunpack.i.h.bf16 %v5057_v43  ;;  %v5058_v45 = vunpack.i.l.bf16 %v5057_v43  ;;  %v5064_v47 = vunpack.i.h.bf16 %v5062_v40  ;;  %v5063_v48 = vunpack.i.l.bf16 %v5062_v40 }
0x1633   :  { %v3876_v49 = vsel %vm196_vm4, %v3835_v34, %v5059_v44  ;;  %v3880_v50 = vsel %vm196_vm4, %v3856_v37, %v5058_v45 }
0x1634   :  { %v5067_v51 = vpop.permute.xlu1 %5066  ;;  %v3881_v54 = vsel %vm1877_vm9, %v3880_v50, %v5063_v48  ;;  %v3877_v55 = vsel %vm1877_vm9, %v3876_v49, %v5064_v47 }
0x1635   :  { %v5069_v52 = vunpack.i.h.bf16 %v5067_v51  ;;  %v5068_v53 = vunpack.i.l.bf16 %v5067_v51 }
0x1637   :  { %v3882_v56 = vsel %vm3878_vm11, %v3881_v54, %v5068_v53  ;;  %v3879_v57 = vsel %vm3878_vm11, %v3877_v55, %v5069_v52 }
0x1638   :  { %3986 = vmatprep.mubr.f32.mxu1 %v3882_v56 }
0x1639   :  { %3987 = vmatmul.mubr.f32.vlgmr.msra.gmra.mrb[44].mxu1 %v3879_v57 }
0x163a   :  { %4889 = vmatprep.mubr.msk.f32.mxu1 %vm5176_vm5, %v5175_v16  ;;  %5036 = vmatpush3.bf16.msra.mxu1 %v5035_v12 }
0x163b   :  { %5037 = vmatprep.subr.bf16.mxu1 %v5186_v58 }
0x163e   :  { %5039 = vmatpush3.bf16.msra.mxu1 %v5038_v21 }
0x170c   :  { %v4548_v1 = vpop.f32.mrb[44].mxu1 }
0x170d   :  { %v4549_v38 = vpop.f32.mrb[45].mxu1 }
0x170e   :  { %v4550_v42 = vadd.f32 %v4549_v38, %v4548_v1 }
0x1710   :  { %v3989_v46 = vadd.f32 %v4550_v42, %v4380_v2 }
0x1712   :  { %v3992_v5 = vmax.f32 %v3989_v46, 0.0 }
0x1714   :  { %4860 = vmatmul.mubr.msk.f32.vlgmr.msra.gmra.mrb[38].mxu0 %vm196_vm4, %v3992_v5 }
0x1715   :  { %5024 = vmatpush3.bf16.msra.mxu0 %v5023_v4  ;;  %4878 = vmatprep.mubr.msk.f32.mxu0 %vm5176_vm5, %v5175_v16  ;;  %v4085_v16 = vld [vmem:[%s6140_s19 + $0x38] sm:$0xff] }
0x1716   :  { %5025 = vmatprep.subr.bf16.mxu0 %v5186_v58  ;;  %v5032_v29 = vpack.c.bf16 %v4085_v16, %v4084_v30 }
0x1719   :  { %5027 = vmatpush3.bf16.msra.mxu0 %v5026_v9 }
0x171a   :  { %5028 = vmatprep.subr.bf16.mxu0 %v5186_v58 }
0x171d   :  { %5030 = vmatpush3.bf16.msra.mxu0 %v5029_v11 }
0x171e   :  { %5031 = vmatprep.subr.bf16.mxu0 %v5186_v58 }
0x1721   :  { %5033 = vmatpush3.bf16.msra.mxu0 %v5032_v29 }
0x17e7   :  { %v4073_v14 = vpop.f32.mrb[38].mxu0 }
0x17e8   :  { %v4074_v15 = vadd.f32 %v4381_v13, %v4073_v14  ;;  %v4861_v17 = vpop.f32.mrb[39].mxu0 }
0x17ea   :  { %v4077_v18 = vmax.f32 %v4074_v15, 0.0 }
0x17ec   :  { %4879 = vmatmul.mubr.msk.f32.vlgmr.msra.gmra.mrb[40].mxu0 %vm1877_vm9, %v4077_v18 }
0x18bf   :  { %v4162_v23 = vpop.f32.mrb[40].mxu0 }
0x18c0   :  { %v4163_v24 = vadd.f32 %v4383_v22, %v4162_v23  ;;  %v4880_v25 = vpop.f32.mrb[41].mxu0 }
0x18c2   :  { %v4166_v26 = vmax.f32 %v4163_v24, 0.0 }
0x18c4   :  { %4890 = vmatmul.mubr.msk.f32.vlgmr.msra.gmra.mrb[46].mxu1 %vm196_vm4, %v4166_v26 }
0x1997   :  { %v4247_v28 = vpop.f32.mrb[46].mxu1 }
0x1998   :  { %v4248_v33 = vadd.f32 %v4385_v27, %v4247_v28  ;;  %v4891_v34 = vpop.f32.mrb[47].mxu1 }
0x199a   :  { %4252 = vst.msk [vmem:[#allocation2] sm:$0x3] %vm4251_vm12, %v4248_v33 }
0x199b   :  { %5161 = shalt.err (!%p5158_p4)
}
0x199c   :  { %s5162_s11 = scalar_lea.hbm %s6144_s23, 32 }
0x199d   :  { %p5163_p5 = scmp.ne.s32.totalorder %s6144_s23, %s5162_s11  ;;  %p5166_p6 = scmp.lt.u32.totalorder %s5162_s11, %s6144_s23 }
0x199f   :  { %p5168_p7 = pnand %p5166_p6, %p5163_p5 }
0x19a1   :  { %5171 = shalt.err (!%p5168_p7)
}
0x19a2   :  { %4262 = dma.vmem_to_hbm [thread:$0]  %s4260_s14, 32, %s6144_s23, [#allocation3]  }
0x19a3   :  { %5172 = dma.done.wait [#allocation3], 32  }
0x19a4   :  { %5173 = vsyncadd [#allocation3], 4294967264 }
0x19a5   :  { %4266 = vsyncpa [#allocation3], 1 }

</bundles_post_ra>
